<compile_context>
chip_gen: v6e
topology: v6e:2x2x1
jax: 0.10.0
libtpu: 0.0.40
codegen_flags: <defaults>
</compile_context>

<pallas_src>
import math
from functools import partial

import jax
import jax.numpy as jnp
from jax.experimental import pallas as pl
from jax.experimental.pallas import tpu as pltpu


def _layernorm(x, w, b, eps=1e-5):
    mu = jnp.mean(x, axis=-1, keepdims=True)
    xc = x - mu
    var = jnp.mean(xc * xc, axis=-1, keepdims=True)
    return xc * jax.lax.rsqrt(var + eps) * w + b


def _decoder_stack_kernel(N, x_ref,
                          wq_ref, bq_ref, wk_ref, bk_ref, wv_ref, bv_ref,
                          wo_ref, bo_ref, ln1w_ref, ln1b_ref,
                          w1_ref, b1_ref, w2_ref, b2_ref, ln2w_ref, ln2b_ref,
                          hw_ref, hb_ref, out_ref, carry_ref):
    """One (batch_block, layer) grid step of the transformer stack (+ fused head)."""
    l = pl.program_id(1)
    H = wq_ref.shape[1]          # number of heads
    HD = wq_ref.shape[3]         # head dim
    BN = x_ref.shape[0]          # batch_block * N rows
    bb = BN // N
    scale = 1.0 / math.sqrt(HD)

    # First layer: load the input rows; carry_ref stays VMEM-resident across the
    # layer axis and acts as the layer-to-layer accumulator (f32).
    @pl.when(l == 0)
    def _():
        carry_ref[...] = x_ref[...].astype(jnp.float32)

    x = carry_ref[...]                                   # (BN, E) f32
    xb = x.astype(jnp.bfloat16)

    # --- multi-head self-attention (dropout = 0) ---
    # Per-head weights avoid lane slicing / head concatenation entirely.
    attn = jnp.zeros_like(x)
    for h in range(H):                                   # static unrolled, H small
        qh = jnp.dot(xb, wq_ref[0, h], preferred_element_type=jnp.float32) + bq_ref[0, h]
        kh = jnp.dot(xb, wk_ref[0, h], preferred_element_type=jnp.float32) + bk_ref[0, h]
        vh = jnp.dot(xb, wv_ref[0, h], preferred_element_type=jnp.float32) + bv_ref[0, h]
        q3 = qh.astype(jnp.bfloat16).reshape(bb, N, HD)  # sublane-aligned reshape
        k3 = kh.astype(jnp.bfloat16).reshape(bb, N, HD)
        v3 = vh.astype(jnp.bfloat16).reshape(bb, N, HD)
        s = jnp.einsum('bqd,bkd->bqk', q3, k3,
                       preferred_element_type=jnp.float32) * scale      # (bb, N, N)
        s = s - jnp.max(s, axis=-1, keepdims=True)
        p = jnp.exp(s)
        p = p * pl.reciprocal(jnp.sum(p, axis=-1, keepdims=True), approx=True)
        o3 = jnp.einsum('bqk,bkd->bqd', p.astype(jnp.bfloat16), v3,
                        preferred_element_type=jnp.float32)              # (bb, N, HD)
        attn = attn + jnp.dot(o3.astype(jnp.bfloat16).reshape(BN, HD), wo_ref[0, h],
                              preferred_element_type=jnp.float32)
    attn = attn + bo_ref[0]

    x = _layernorm(x + attn, ln1w_ref[0], ln1b_ref[0])   # post-norm

    # --- feed-forward (relu) ---
    h1 = jnp.dot(x.astype(jnp.bfloat16), w1_ref[0],
                 preferred_element_type=jnp.float32) + b1_ref[0]
    h1 = jnp.maximum(h1, 0.0)
    h2 = jnp.dot(h1.astype(jnp.bfloat16), w2_ref[0],
                 preferred_element_type=jnp.float32) + b2_ref[0]

    x = _layernorm(x + h2, ln2w_ref[0], ln2b_ref[0])
    carry_ref[...] = x

    # --- fused head: Linear(E, 2) + sigmoid, only on the last layer ---
    @pl.when(l == pl.num_programs(1) - 1)
    def _():
        logits = jnp.dot(x.astype(jnp.bfloat16), hw_ref[...],
                         preferred_element_type=jnp.float32) + hb_ref[...]
        out_ref[...] = 1.0 / (1.0 + jnp.exp(-logits))


def decoder_stack(feats, p, *, batch_block=None):
    """Full transformer stack + head probs: (B, N, E) -> (B, N, 2) sigmoid probs."""
    B, N, E = feats.shape
    L = p["wq"].shape[0]
    bb = B if batch_block is None else batch_block
    assert B % bb == 0
    num_bb = B // bb

    x2 = feats.reshape(B * N, E).astype(jnp.float32)

    layer_ws = [p["wq"], p["bq"], p["wk"], p["bk"], p["wv"], p["bv"],
                p["wo"], p["bo"], p["ln1w"], p["ln1b"],
                p["w1"], p["b1"], p["w2"], p["b2"], p["ln2w"], p["ln2b"]]

    def layer_spec(arr):  # whole per-layer slab, indexed only by the layer axis
        nd = arr.ndim
        return pl.BlockSpec((1,) + arr.shape[1:],
                            lambda i, l, _nd=nd: (l,) + (0,) * (_nd - 1))

    def const_spec(arr):  # same slab for every grid step (head weights)
        nd = arr.ndim
        return pl.BlockSpec(arr.shape, lambda i, l, _nd=nd: (0,) * _nd)

    grid_spec = pltpu.PrefetchScalarGridSpec(
        num_scalar_prefetch=0,
        grid=(num_bb, L),
        in_specs=[pl.BlockSpec((bb * N, E), lambda i, l: (i, 0))]
                 + [layer_spec(w) for w in layer_ws]
                 + [const_spec(p["head_w"]), const_spec(p["head_b"])],
        out_specs=pl.BlockSpec((bb * N, 2), lambda i, l: (i, 0)),
        scratch_shapes=[pltpu.VMEM((bb * N, E), jnp.float32)],
    )
    probs2 = pl.pallas_call(
        partial(_decoder_stack_kernel, N),
        out_shape=jax.ShapeDtypeStruct((B * N, 2), jnp.float32),
        grid_spec=grid_spec,
        compiler_params=pltpu.CompilerParams(
            dimension_semantics=("parallel", "arbitrary")),
    )(x2, *layer_ws, p["head_w"], p["head_b"])
    return probs2.reshape(B, N, 2)


def init_params(key, N, E, H, L, F):
    HD = E // H
    ks = jax.random.split(key, 10)
    bf = jnp.bfloat16

    def nrm(k, shape, std=0.02, dtype=jnp.float32):
        return (std * jax.random.normal(k, shape)).astype(dtype)

    return dict(
        pos=nrm(ks[0], (1, N, E)),                  # pos_embedding.pos
        mask_token=nrm(ks[1], (1, E)),              # nn.init.normal_(std=0.02)
        # per-head attention projections (pre-transposed to (in, out) per head)
        wq=nrm(ks[2], (L, H, E, HD), dtype=bf),
        bq=jnp.zeros((L, H, 1, HD), jnp.float32),
        wk=nrm(ks[3], (L, H, E, HD), dtype=bf),
        bk=jnp.zeros((L, H, 1, HD), jnp.float32),
        wv=nrm(ks[4], (L, H, E, HD), dtype=bf),
        bv=jnp.zeros((L, H, 1, HD), jnp.float32),
        wo=nrm(ks[5], (L, H, HD, E), dtype=bf),     # out_proj, per head (HD, E)
        bo=jnp.zeros((L, 1, E), jnp.float32),
        ln1w=jnp.ones((L, 1, E), jnp.float32),
        ln1b=jnp.zeros((L, 1, E), jnp.float32),
        w1=nrm(ks[6], (L, E, F), dtype=bf),         # linear1
        b1=jnp.zeros((L, 1, F), jnp.float32),
        w2=nrm(ks[7], (L, F, E), dtype=bf),         # linear2
        b2=jnp.zeros((L, 1, E), jnp.float32),
        ln2w=jnp.ones((L, 1, E), jnp.float32),
        ln2b=jnp.zeros((L, 1, E), jnp.float32),
        head_w=nrm(ks[8], (E, 2), dtype=bf),        # head: Linear(E, 2)
        head_b=jnp.zeros((1, 2), jnp.float32),
    )


def mae_decoder_forward(params, features, backward_indexes, sample_key,
                        true_sparsity=True):
    B, T, E = features.shape
    N = backward_indexes.shape[1]

    # cat([features, mask_token.expand(...)], dim=1)
    mask_tok = jnp.broadcast_to(params["mask_token"][None], (B, N - T, E))
    feats = jnp.concatenate([features, mask_tok], axis=1)         # (B, N, E)
    # take_indexes(features, backward_indexes)
    feats = feats[jnp.arange(B)[:, None], backward_indexes]
    feats = feats + params["pos"]                                 # + pos_embedding.pos

    probs = decoder_stack(feats, params)                          # Pallas hot path

    expr = probs[..., 0]                                          # sigmoid(expr_logits)
    # mask: zeros with [:, T:] = 1, then gathered by backward_indexes
    mask = (backward_indexes >= T).astype(jnp.float32)

    if not true_sparsity:
        return expr, mask

    sparsity_probs = probs[..., 1]                                # sigmoid(sparsity_logits)
    # TODO(synk): torch.bernoulli uses torch's RNG stream; semantics reproduced
    # with jax.random.bernoulli (straight-through: forward value == sample).
    sample = jax.random.bernoulli(sample_key, sparsity_probs).astype(jnp.float32)
    sparsity = sample + sparsity_probs - jax.lax.stop_gradient(sparsity_probs)
    expr = expr * sparsity
    return expr, sparsity_probs, mask


if __name__ == "__main__":
    # Small shapes consistent with the module: emb_dim divisible by num_head=3.
    B, T, N, E, H, L, F = 2, 8, 16, 48, 3, 2, 64

    key = jax.random.PRNGKey(0)
    k_param, k_feat, k_idx, k_sample = jax.random.split(key, 4)

    params = init_params(k_param, N, E, H, L, F)
    features = jax.random.normal(k_feat, (B, T, E), jnp.float32)
    backward_indexes = jnp.stack(
        [jax.random.permutation(jax.random.fold_in(k_idx, i), N) for i in range(B)]
    ).astype(jnp.int32)                                           # (B, N) permutations

    expr, sparsity_probs, mask = mae_decoder_forward(
        params, features, backward_indexes, k_sample)
    jax.block_until_ready((expr, sparsity_probs, mask))

    assert expr.shape == (B, N)
    assert sparsity_probs.shape == (B, N)
    assert mask.shape == (B, N)
    print("KERNEL_OK")
</pallas_src>

<mosaic_0001>
module attributes {stable_mosaic.version = 11 : i64} {
  func.func @_decoder_stack_kernel(%arg0: i32, %arg1: i32, %arg2: memref<32x48xf32, #tpu.memory_space<vmem>>, %arg3: memref<1x3x48x16xbf16, #tpu.memory_space<vmem>>, %arg4: memref<1x3x1x16xf32, #tpu.memory_space<vmem>>, %arg5: memref<1x3x48x16xbf16, #tpu.memory_space<vmem>>, %arg6: memref<1x3x1x16xf32, #tpu.memory_space<vmem>>, %arg7: memref<1x3x48x16xbf16, #tpu.memory_space<vmem>>, %arg8: memref<1x3x1x16xf32, #tpu.memory_space<vmem>>, %arg9: memref<1x3x16x48xbf16, #tpu.memory_space<vmem>>, %arg10: memref<1x1x48xf32, #tpu.memory_space<vmem>>, %arg11: memref<1x1x48xf32, #tpu.memory_space<vmem>>, %arg12: memref<1x1x48xf32, #tpu.memory_space<vmem>>, %arg13: memref<1x48x64xbf16, #tpu.memory_space<vmem>>, %arg14: memref<1x1x64xf32, #tpu.memory_space<vmem>>, %arg15: memref<1x64x48xbf16, #tpu.memory_space<vmem>>, %arg16: memref<1x1x48xf32, #tpu.memory_space<vmem>>, %arg17: memref<1x1x48xf32, #tpu.memory_space<vmem>>, %arg18: memref<1x1x48xf32, #tpu.memory_space<vmem>>, %arg19: memref<48x2xbf16, #tpu.memory_space<vmem>>, %arg20: memref<1x2xf32, #tpu.memory_space<vmem>>, %arg21: memref<32x2xf32, #tpu.memory_space<vmem>>, %arg22: memref<32x48xf32, #tpu.memory_space<vmem>>) attributes {dimension_semantics = [#tpu.dimension_semantics<parallel>, #tpu.dimension_semantics<arbitrary>], iteration_bounds = array<i64: 1, 2>, scalar_prefetch = 0 : i64, scratch_operands = 1 : i64, tpu.core_type = #tpu.core_type<tc>, window_params = [{transform_indices = @transform_0, window_bounds = array<i64: 32, 48>}, {transform_indices = @transform_1, window_bounds = array<i64: 1, 3, 48, 16>}, {transform_indices = @transform_2, window_bounds = array<i64: 1, 3, 1, 16>}, {transform_indices = @transform_3, window_bounds = array<i64: 1, 3, 48, 16>}, {transform_indices = @transform_4, window_bounds = array<i64: 1, 3, 1, 16>}, {transform_indices = @transform_5, window_bounds = array<i64: 1, 3, 48, 16>}, {transform_indices = @transform_6, window_bounds = array<i64: 1, 3, 1, 16>}, {transform_indices = @transform_7, window_bounds = array<i64: 1, 3, 16, 48>}, {transform_indices = @transform_8, window_bounds = array<i64: 1, 1, 48>}, {transform_indices = @transform_9, window_bounds = array<i64: 1, 1, 48>}, {transform_indices = @transform_10, window_bounds = array<i64: 1, 1, 48>}, {transform_indices = @transform_11, window_bounds = array<i64: 1, 48, 64>}, {transform_indices = @transform_12, window_bounds = array<i64: 1, 1, 64>}, {transform_indices = @transform_13, window_bounds = array<i64: 1, 64, 48>}, {transform_indices = @transform_14, window_bounds = array<i64: 1, 1, 48>}, {transform_indices = @transform_15, window_bounds = array<i64: 1, 1, 48>}, {transform_indices = @transform_16, window_bounds = array<i64: 1, 1, 48>}, {pipeline_mode = #tpu.pipeline_mode<synchronous>, transform_indices = @transform_17, window_bounds = array<i64: 48, 2>}, {pipeline_mode = #tpu.pipeline_mode<synchronous>, transform_indices = @transform_18, window_bounds = array<i64: 1, 2>}, {transform_indices = @transform_19, window_bounds = array<i64: 32, 2>}]} {
    %c0_i32 = arith.constant 0 : i32
    %0 = arith.cmpi eq, %arg1, %c0_i32 : i32
    %1 = arith.extui %0 : i1 to i32
    %c0_i32_0 = arith.constant 0 : i32
    %2 = arith.cmpi ne, %1, %c0_i32_0 : i32
    scf.if %2 {
      %c0_154 = arith.constant 0 : index
      %c0_155 = arith.constant 0 : index
      %226 = vector.load %arg2[%c0_154, %c0_155] : memref<32x48xf32, #tpu.memory_space<vmem>>, vector<32x48xf32>
      %c0_156 = arith.constant 0 : index
      %c0_157 = arith.constant 0 : index
      %227 = vector.load %arg22[%c0_156, %c0_157] : memref<32x48xf32, #tpu.memory_space<vmem>>, vector<32x48xf32>
      tpu.vector_store %arg22[%c0_156, %c0_157], %226 {strides = array<i32>} : memref<32x48xf32, #tpu.memory_space<vmem>>, vector<32x48xf32>,
    } else {
    }
    %c0 = arith.constant 0 : index
    %c0_1 = arith.constant 0 : index
    %3 = vector.load %arg22[%c0, %c0_1] : memref<32x48xf32, #tpu.memory_space<vmem>>, vector<32x48xf32>
    %4 = arith.truncf %3 : vector<32x48xf32> to vector<32x48xbf16>
    %cst = arith.constant 0.000000e+00 : f32
    %5 = vector.broadcast %cst : f32 to vector<32x48xf32>
    %c0_2 = arith.constant 0 : index
    %c0_3 = arith.constant 0 : index
    %c0_4 = arith.constant 0 : index
    %c0_5 = arith.constant 0 : index
    %6 = vector.load %arg3[%c0_2, %c0_3, %c0_4, %c0_5] : memref<1x3x48x16xbf16, #tpu.memory_space<vmem>>, vector<1x1x48x16xbf16>
    %7 = vector.shape_cast %6 : vector<1x1x48x16xbf16> to vector<48x16xbf16>
    %cst_6 = arith.constant dense<0.000000e+00> : vector<32x16xf32>
    %8 = tpu.matmul %4, %7, %cst_6 {dimension_numbers = #tpu.dot_dimension_numbers<[1], [0], [0], [1], [0, 0, 1, 1], [], []>} : vector<32x48xbf16>, vector<48x16xbf16>, vector<32x16xf32> -> vector<32x16xf32>
    %c0_7 = arith.constant 0 : index
    %c0_8 = arith.constant 0 : index
    %c0_9 = arith.constant 0 : index
    %c0_10 = arith.constant 0 : index
    %9 = vector.load %arg4[%c0_7, %c0_8, %c0_9, %c0_10] : memref<1x3x1x16xf32, #tpu.memory_space<vmem>>, vector<1x1x1x16xf32>
    %10 = vector.shape_cast %9 : vector<1x1x1x16xf32> to vector<1x16xf32>
    %11 = vector.broadcast %10 : vector<1x16xf32> to vector<32x16xf32>
    %12 = arith.addf %8, %11 : vector<32x16xf32>
    %c0_11 = arith.constant 0 : index
    %c0_12 = arith.constant 0 : index
    %c0_13 = arith.constant 0 : index
    %c0_14 = arith.constant 0 : index
    %13 = vector.load %arg5[%c0_11, %c0_12, %c0_13, %c0_14] : memref<1x3x48x16xbf16, #tpu.memory_space<vmem>>, vector<1x1x48x16xbf16>
    %14 = vector.shape_cast %13 : vector<1x1x48x16xbf16> to vector<48x16xbf16>
    %cst_15 = arith.constant dense<0.000000e+00> : vector<32x16xf32>
    %15 = tpu.matmul %4, %14, %cst_15 {dimension_numbers = #tpu.dot_dimension_numbers<[1], [0], [0], [1], [0, 0, 1, 1], [], []>} : vector<32x48xbf16>, vector<48x16xbf16>, vector<32x16xf32> -> vector<32x16xf32>
    %c0_16 = arith.constant 0 : index
    %c0_17 = arith.constant 0 : index
    %c0_18 = arith.constant 0 : index
    %c0_19 = arith.constant 0 : index
    %16 = vector.load %arg6[%c0_16, %c0_17, %c0_18, %c0_19] : memref<1x3x1x16xf32, #tpu.memory_space<vmem>>, vector<1x1x1x16xf32>
    %17 = vector.shape_cast %16 : vector<1x1x1x16xf32> to vector<1x16xf32>
    %18 = vector.broadcast %17 : vector<1x16xf32> to vector<32x16xf32>
    %19 = arith.addf %15, %18 : vector<32x16xf32>
    %c0_20 = arith.constant 0 : index
    %c0_21 = arith.constant 0 : index
    %c0_22 = arith.constant 0 : index
    %c0_23 = arith.constant 0 : index
    %20 = vector.load %arg7[%c0_20, %c0_21, %c0_22, %c0_23] : memref<1x3x48x16xbf16, #tpu.memory_space<vmem>>, vector<1x1x48x16xbf16>
    %21 = vector.shape_cast %20 : vector<1x1x48x16xbf16> to vector<48x16xbf16>
    %cst_24 = arith.constant dense<0.000000e+00> : vector<32x16xf32>
    %22 = tpu.matmul %4, %21, %cst_24 {dimension_numbers = #tpu.dot_dimension_numbers<[1], [0], [0], [1], [0, 0, 1, 1], [], []>} : vector<32x48xbf16>, vector<48x16xbf16>, vector<32x16xf32> -> vector<32x16xf32>
    %c0_25 = arith.constant 0 : index
    %c0_26 = arith.constant 0 : index
    %c0_27 = arith.constant 0 : index
    %c0_28 = arith.constant 0 : index
    %23 = vector.load %arg8[%c0_25, %c0_26, %c0_27, %c0_28] : memref<1x3x1x16xf32, #tpu.memory_space<vmem>>, vector<1x1x1x16xf32>
    %24 = vector.shape_cast %23 : vector<1x1x1x16xf32> to vector<1x16xf32>
    %25 = vector.broadcast %24 : vector<1x16xf32> to vector<32x16xf32>
    %26 = arith.addf %22, %25 : vector<32x16xf32>
    %27 = arith.truncf %12 : vector<32x16xf32> to vector<32x16xbf16>
    %28 = vector.shape_cast %27 : vector<32x16xbf16> to vector<2x16x16xbf16>
    %29 = arith.truncf %19 : vector<32x16xf32> to vector<32x16xbf16>
    %30 = vector.shape_cast %29 : vector<32x16xbf16> to vector<2x16x16xbf16>
    %31 = arith.truncf %26 : vector<32x16xf32> to vector<32x16xbf16>
    %32 = vector.shape_cast %31 : vector<32x16xbf16> to vector<2x16x16xbf16>
    "tpu.trace_start"() <{level = 10 : i32, message = "bqd,bkd->bqk"}> : () -> ()
    %cst_29 = arith.constant dense<0.000000e+00> : vector<2x16x16xf32>
    %33 = tpu.matmul %28, %30, %cst_29 {dimension_numbers = #tpu.dot_dimension_numbers<[2], [2], [1], [1], [0, 0, 0, 1, 1, 1], [0], [0]>} : vector<2x16x16xbf16>, vector<2x16x16xbf16>, vector<2x16x16xf32> -> vector<2x16x16xf32>
    "tpu.trace_stop"() : () -> ()
    %cst_30 = arith.constant 2.500000e-01 : f32
    %34 = vector.broadcast %cst_30 : f32 to vector<2x16x16xf32>
    %35 = arith.mulf %33, %34 : vector<2x16x16xf32>
    %cst_31 = arith.constant dense<0xFF800000> : vector<2x16xf32>
    %36 = vector.multi_reduction <maximumf>, %35, %cst_31 [2] : vector<2x16x16xf32> to vector<2x16xf32>
    %37 = vector.shape_cast %36 : vector<2x16xf32> to vector<2x16x1xf32>
    %38 = vector.broadcast %37 : vector<2x16x1xf32> to vector<2x16x16xf32>
    %39 = arith.subf %35, %38 : vector<2x16x16xf32>
    %40 = math.exp %39 : vector<2x16x16xf32>
    %cst_32 = arith.constant dense<0.000000e+00> : vector<2x16xf32>
    %41 = vector.multi_reduction <add>, %40, %cst_32 [2] : vector<2x16x16xf32> to vector<2x16xf32>
    %42 = vector.shape_cast %41 : vector<2x16xf32> to vector<2x16x1xf32>
    %43 = tpu.reciprocal %42 {approx = true} : vector<2x16x1xf32> -> vector<2x16x1xf32>
    %44 = vector.broadcast %43 : vector<2x16x1xf32> to vector<2x16x16xf32>
    %45 = arith.mulf %40, %44 : vector<2x16x16xf32>
    %46 = arith.truncf %45 : vector<2x16x16xf32> to vector<2x16x16xbf16>
    "tpu.trace_start"() <{level = 10 : i32, message = "bqk,bkd->bqd"}> : () -> ()
    %cst_33 = arith.constant dense<0.000000e+00> : vector<2x16x16xf32>
    %47 = tpu.matmul %46, %32, %cst_33 {dimension_numbers = #tpu.dot_dimension_numbers<[2], [1], [1], [2], [0, 0, 0, 1, 1, 2], [0], [0]>} : vector<2x16x16xbf16>, vector<2x16x16xbf16>, vector<2x16x16xf32> -> vector<2x16x16xf32>
    "tpu.trace_stop"() : () -> ()
    %48 = arith.truncf %47 : vector<2x16x16xf32> to vector<2x16x16xbf16>
    %49 = vector.shape_cast %48 : vector<2x16x16xbf16> to vector<32x16xbf16>
    %c0_34 = arith.constant 0 : index
    %c0_35 = arith.constant 0 : index
    %c0_36 = arith.constant 0 : index
    %c0_37 = arith.constant 0 : index
    %50 = vector.load %arg9[%c0_34, %c0_35, %c0_36, %c0_37] : memref<1x3x16x48xbf16, #tpu.memory_space<vmem>>, vector<1x1x16x48xbf16>
    %51 = vector.shape_cast %50 : vector<1x1x16x48xbf16> to vector<16x48xbf16>
    %cst_38 = arith.constant dense<0.000000e+00> : vector<32x48xf32>
    %52 = tpu.matmul %49, %51, %cst_38 {dimension_numbers = #tpu.dot_dimension_numbers<[1], [0], [0], [1], [0, 0, 1, 1], [], []>} : vector<32x16xbf16>, vector<16x48xbf16>, vector<32x48xf32> -> vector<32x48xf32>
    %53 = arith.addf %5, %52 : vector<32x48xf32>
    %c0_39 = arith.constant 0 : index
    %c1 = arith.constant 1 : index
    %c0_40 = arith.constant 0 : index
    %c0_41 = arith.constant 0 : index
    %54 = vector.load %arg3[%c0_39, %c1, %c0_40, %c0_41] : memref<1x3x48x16xbf16, #tpu.memory_space<vmem>>, vector<1x1x48x16xbf16>
    %55 = vector.shape_cast %54 : vector<1x1x48x16xbf16> to vector<48x16xbf16>
    %cst_42 = arith.constant dense<0.000000e+00> : vector<32x16xf32>
    %56 = tpu.matmul %4, %55, %cst_42 {dimension_numbers = #tpu.dot_dimension_numbers<[1], [0], [0], [1], [0, 0, 1, 1], [], []>} : vector<32x48xbf16>, vector<48x16xbf16>, vector<32x16xf32> -> vector<32x16xf32>
    %c0_43 = arith.constant 0 : index
    %c1_44 = arith.constant 1 : index
    %c0_45 = arith.constant 0 : index
    %c0_46 = arith.constant 0 : index
    %57 = vector.load %arg4[%c0_43, %c1_44, %c0_45, %c0_46] : memref<1x3x1x16xf32, #tpu.memory_space<vmem>>, vector<1x1x1x16xf32>
    %58 = vector.shape_cast %57 : vector<1x1x1x16xf32> to vector<1x16xf32>
    %59 = vector.broadcast %58 : vector<1x16xf32> to vector<32x16xf32>
    %60 = arith.addf %56, %59 : vector<32x16xf32>
    %c0_47 = arith.constant 0 : index
    %c1_48 = arith.constant 1 : index
    %c0_49 = arith.constant 0 : index
    %c0_50 = arith.constant 0 : index
    %61 = vector.load %arg5[%c0_47, %c1_48, %c0_49, %c0_50] : memref<1x3x48x16xbf16, #tpu.memory_space<vmem>>, vector<1x1x48x16xbf16>
    %62 = vector.shape_cast %61 : vector<1x1x48x16xbf16> to vector<48x16xbf16>
    %cst_51 = arith.constant dense<0.000000e+00> : vector<32x16xf32>
    %63 = tpu.matmul %4, %62, %cst_51 {dimension_numbers = #tpu.dot_dimension_numbers<[1], [0], [0], [1], [0, 0, 1, 1], [], []>} : vector<32x48xbf16>, vector<48x16xbf16>, vector<32x16xf32> -> vector<32x16xf32>
    %c0_52 = arith.constant 0 : index
    %c1_53 = arith.constant 1 : index
    %c0_54 = arith.constant 0 : index
    %c0_55 = arith.constant 0 : index
    %64 = vector.load %arg6[%c0_52, %c1_53, %c0_54, %c0_55] : memref<1x3x1x16xf32, #tpu.memory_space<vmem>>, vector<1x1x1x16xf32>
    %65 = vector.shape_cast %64 : vector<1x1x1x16xf32> to vector<1x16xf32>
    %66 = vector.broadcast %65 : vector<1x16xf32> to vector<32x16xf32>
    %67 = arith.addf %63, %66 : vector<32x16xf32>
    %c0_56 = arith.constant 0 : index
    %c1_57 = arith.constant 1 : index
    %c0_58 = arith.constant 0 : index
    %c0_59 = arith.constant 0 : index
    %68 = vector.load %arg7[%c0_56, %c1_57, %c0_58, %c0_59] : memref<1x3x48x16xbf16, #tpu.memory_space<vmem>>, vector<1x1x48x16xbf16>
    %69 = vector.shape_cast %68 : vector<1x1x48x16xbf16> to vector<48x16xbf16>
    %cst_60 = arith.constant dense<0.000000e+00> : vector<32x16xf32>
    %70 = tpu.matmul %4, %69, %cst_60 {dimension_numbers = #tpu.dot_dimension_numbers<[1], [0], [0], [1], [0, 0, 1, 1], [], []>} : vector<32x48xbf16>, vector<48x16xbf16>, vector<32x16xf32> -> vector<32x16xf32>
    %c0_61 = arith.constant 0 : index
    %c1_62 = arith.constant 1 : index
    %c0_63 = arith.constant 0 : index
    %c0_64 = arith.constant 0 : index
    %71 = vector.load %arg8[%c0_61, %c1_62, %c0_63, %c0_64] : memref<1x3x1x16xf32, #tpu.memory_space<vmem>>, vector<1x1x1x16xf32>
    %72 = vector.shape_cast %71 : vector<1x1x1x16xf32> to vector<1x16xf32>
    %73 = vector.broadcast %72 : vector<1x16xf32> to vector<32x16xf32>
    %74 = arith.addf %70, %73 : vector<32x16xf32>
    %75 = arith.truncf %60 : vector<32x16xf32> to vector<32x16xbf16>
    %76 = vector.shape_cast %75 : vector<32x16xbf16> to vector<2x16x16xbf16>
    %77 = arith.truncf %67 : vector<32x16xf32> to vector<32x16xbf16>
    %78 = vector.shape_cast %77 : vector<32x16xbf16> to vector<2x16x16xbf16>
    %79 = arith.truncf %74 : vector<32x16xf32> to vector<32x16xbf16>
    %80 = vector.shape_cast %79 : vector<32x16xbf16> to vector<2x16x16xbf16>
    "tpu.trace_start"() <{level = 10 : i32, message = "bqd,bkd->bqk"}> : () -> ()
    %cst_65 = arith.constant dense<0.000000e+00> : vector<2x16x16xf32>
    %81 = tpu.matmul %76, %78, %cst_65 {dimension_numbers = #tpu.dot_dimension_numbers<[2], [2], [1], [1], [0, 0, 0, 1, 1, 1], [0], [0]>} : vector<2x16x16xbf16>, vector<2x16x16xbf16>, vector<2x16x16xf32> -> vector<2x16x16xf32>
    "tpu.trace_stop"() : () -> ()
    %cst_66 = arith.constant 2.500000e-01 : f32
    %82 = vector.broadcast %cst_66 : f32 to vector<2x16x16xf32>
    %83 = arith.mulf %81, %82 : vector<2x16x16xf32>
    %cst_67 = arith.constant dense<0xFF800000> : vector<2x16xf32>
    %84 = vector.multi_reduction <maximumf>, %83, %cst_67 [2] : vector<2x16x16xf32> to vector<2x16xf32>
    %85 = vector.shape_cast %84 : vector<2x16xf32> to vector<2x16x1xf32>
    %86 = vector.broadcast %85 : vector<2x16x1xf32> to vector<2x16x16xf32>
    %87 = arith.subf %83, %86 : vector<2x16x16xf32>
    %88 = math.exp %87 : vector<2x16x16xf32>
    %cst_68 = arith.constant dense<0.000000e+00> : vector<2x16xf32>
    %89 = vector.multi_reduction <add>, %88, %cst_68 [2] : vector<2x16x16xf32> to vector<2x16xf32>
    %90 = vector.shape_cast %89 : vector<2x16xf32> to vector<2x16x1xf32>
    %91 = tpu.reciprocal %90 {approx = true} : vector<2x16x1xf32> -> vector<2x16x1xf32>
    %92 = vector.broadcast %91 : vector<2x16x1xf32> to vector<2x16x16xf32>
    %93 = arith.mulf %88, %92 : vector<2x16x16xf32>
    %94 = arith.truncf %93 : vector<2x16x16xf32> to vector<2x16x16xbf16>
    "tpu.trace_start"() <{level = 10 : i32, message = "bqk,bkd->bqd"}> : () -> ()
    %cst_69 = arith.constant dense<0.000000e+00> : vector<2x16x16xf32>
    %95 = tpu.matmul %94, %80, %cst_69 {dimension_numbers = #tpu.dot_dimension_numbers<[2], [1], [1], [2], [0, 0, 0, 1, 1, 2], [0], [0]>} : vector<2x16x16xbf16>, vector<2x16x16xbf16>, vector<2x16x16xf32> -> vector<2x16x16xf32>
    "tpu.trace_stop"() : () -> ()
    %96 = arith.truncf %95 : vector<2x16x16xf32> to vector<2x16x16xbf16>
    %97 = vector.shape_cast %96 : vector<2x16x16xbf16> to vector<32x16xbf16>
    %c0_70 = arith.constant 0 : index
    %c1_71 = arith.constant 1 : index
    %c0_72 = arith.constant 0 : index
    %c0_73 = arith.constant 0 : index
    %98 = vector.load %arg9[%c0_70, %c1_71, %c0_72, %c0_73] : memref<1x3x16x48xbf16, #tpu.memory_space<vmem>>, vector<1x1x16x48xbf16>
    %99 = vector.shape_cast %98 : vector<1x1x16x48xbf16> to vector<16x48xbf16>
    %cst_74 = arith.constant dense<0.000000e+00> : vector<32x48xf32>
    %100 = tpu.matmul %97, %99, %cst_74 {dimension_numbers = #tpu.dot_dimension_numbers<[1], [0], [0], [1], [0, 0, 1, 1], [], []>} : vector<32x16xbf16>, vector<16x48xbf16>, vector<32x48xf32> -> vector<32x48xf32>
    %101 = arith.addf %53, %100 : vector<32x48xf32>
    %c0_75 = arith.constant 0 : index
    %c2 = arith.constant 2 : index
    %c0_76 = arith.constant 0 : index
    %c0_77 = arith.constant 0 : index
    %102 = vector.load %arg3[%c0_75, %c2, %c0_76, %c0_77] : memref<1x3x48x16xbf16, #tpu.memory_space<vmem>>, vector<1x1x48x16xbf16>
    %103 = vector.shape_cast %102 : vector<1x1x48x16xbf16> to vector<48x16xbf16>
    %cst_78 = arith.constant dense<0.000000e+00> : vector<32x16xf32>
    %104 = tpu.matmul %4, %103, %cst_78 {dimension_numbers = #tpu.dot_dimension_numbers<[1], [0], [0], [1], [0, 0, 1, 1], [], []>} : vector<32x48xbf16>, vector<48x16xbf16>, vector<32x16xf32> -> vector<32x16xf32>
    %c0_79 = arith.constant 0 : index
    %c2_80 = arith.constant 2 : index
    %c0_81 = arith.constant 0 : index
    %c0_82 = arith.constant 0 : index
    %105 = vector.load %arg4[%c0_79, %c2_80, %c0_81, %c0_82] : memref<1x3x1x16xf32, #tpu.memory_space<vmem>>, vector<1x1x1x16xf32>
    %106 = vector.shape_cast %105 : vector<1x1x1x16xf32> to vector<1x16xf32>
    %107 = vector.broadcast %106 : vector<1x16xf32> to vector<32x16xf32>
    %108 = arith.addf %104, %107 : vector<32x16xf32>
    %c0_83 = arith.constant 0 : index
    %c2_84 = arith.constant 2 : index
    %c0_85 = arith.constant 0 : index
    %c0_86 = arith.constant 0 : index
    %109 = vector.load %arg5[%c0_83, %c2_84, %c0_85, %c0_86] : memref<1x3x48x16xbf16, #tpu.memory_space<vmem>>, vector<1x1x48x16xbf16>
    %110 = vector.shape_cast %109 : vector<1x1x48x16xbf16> to vector<48x16xbf16>
    %cst_87 = arith.constant dense<0.000000e+00> : vector<32x16xf32>
    %111 = tpu.matmul %4, %110, %cst_87 {dimension_numbers = #tpu.dot_dimension_numbers<[1], [0], [0], [1], [0, 0, 1, 1], [], []>} : vector<32x48xbf16>, vector<48x16xbf16>, vector<32x16xf32> -> vector<32x16xf32>
    %c0_88 = arith.constant 0 : index
    %c2_89 = arith.constant 2 : index
    %c0_90 = arith.constant 0 : index
    %c0_91 = arith.constant 0 : index
    %112 = vector.load %arg6[%c0_88, %c2_89, %c0_90, %c0_91] : memref<1x3x1x16xf32, #tpu.memory_space<vmem>>, vector<1x1x1x16xf32>
    %113 = vector.shape_cast %112 : vector<1x1x1x16xf32> to vector<1x16xf32>
    %114 = vector.broadcast %113 : vector<1x16xf32> to vector<32x16xf32>
    %115 = arith.addf %111, %114 : vector<32x16xf32>
    %c0_92 = arith.constant 0 : index
    %c2_93 = arith.constant 2 : index
    %c0_94 = arith.constant 0 : index
    %c0_95 = arith.constant 0 : index
    %116 = vector.load %arg7[%c0_92, %c2_93, %c0_94, %c0_95] : memref<1x3x48x16xbf16, #tpu.memory_space<vmem>>, vector<1x1x48x16xbf16>
    %117 = vector.shape_cast %116 : vector<1x1x48x16xbf16> to vector<48x16xbf16>
    %cst_96 = arith.constant dense<0.000000e+00> : vector<32x16xf32>
    %118 = tpu.matmul %4, %117, %cst_96 {dimension_numbers = #tpu.dot_dimension_numbers<[1], [0], [0], [1], [0, 0, 1, 1], [], []>} : vector<32x48xbf16>, vector<48x16xbf16>, vector<32x16xf32> -> vector<32x16xf32>
    %c0_97 = arith.constant 0 : index
    %c2_98 = arith.constant 2 : index
    %c0_99 = arith.constant 0 : index
    %c0_100 = arith.constant 0 : index
    %119 = vector.load %arg8[%c0_97, %c2_98, %c0_99, %c0_100] : memref<1x3x1x16xf32, #tpu.memory_space<vmem>>, vector<1x1x1x16xf32>
    %120 = vector.shape_cast %119 : vector<1x1x1x16xf32> to vector<1x16xf32>
    %121 = vector.broadcast %120 : vector<1x16xf32> to vector<32x16xf32>
    %122 = arith.addf %118, %121 : vector<32x16xf32>
    %123 = arith.truncf %108 : vector<32x16xf32> to vector<32x16xbf16>
    %124 = vector.shape_cast %123 : vector<32x16xbf16> to vector<2x16x16xbf16>
    %125 = arith.truncf %115 : vector<32x16xf32> to vector<32x16xbf16>
    %126 = vector.shape_cast %125 : vector<32x16xbf16> to vector<2x16x16xbf16>
    %127 = arith.truncf %122 : vector<32x16xf32> to vector<32x16xbf16>
    %128 = vector.shape_cast %127 : vector<32x16xbf16> to vector<2x16x16xbf16>
    "tpu.trace_start"() <{level = 10 : i32, message = "bqd,bkd->bqk"}> : () -> ()
    %cst_101 = arith.constant dense<0.000000e+00> : vector<2x16x16xf32>
    %129 = tpu.matmul %124, %126, %cst_101 {dimension_numbers = #tpu.dot_dimension_numbers<[2], [2], [1], [1], [0, 0, 0, 1, 1, 1], [0], [0]>} : vector<2x16x16xbf16>, vector<2x16x16xbf16>, vector<2x16x16xf32> -> vector<2x16x16xf32>
    "tpu.trace_stop"() : () -> ()
    %cst_102 = arith.constant 2.500000e-01 : f32
    %130 = vector.broadcast %cst_102 : f32 to vector<2x16x16xf32>
    %131 = arith.mulf %129, %130 : vector<2x16x16xf32>
    %cst_103 = arith.constant dense<0xFF800000> : vector<2x16xf32>
    %132 = vector.multi_reduction <maximumf>, %131, %cst_103 [2] : vector<2x16x16xf32> to vector<2x16xf32>
    %133 = vector.shape_cast %132 : vector<2x16xf32> to vector<2x16x1xf32>
    %134 = vector.broadcast %133 : vector<2x16x1xf32> to vector<2x16x16xf32>
    %135 = arith.subf %131, %134 : vector<2x16x16xf32>
    %136 = math.exp %135 : vector<2x16x16xf32>
    %cst_104 = arith.constant dense<0.000000e+00> : vector<2x16xf32>
    %137 = vector.multi_reduction <add>, %136, %cst_104 [2] : vector<2x16x16xf32> to vector<2x16xf32>
    %138 = vector.shape_cast %137 : vector<2x16xf32> to vector<2x16x1xf32>
    %139 = tpu.reciprocal %138 {approx = true} : vector<2x16x1xf32> -> vector<2x16x1xf32>
    %140 = vector.broadcast %139 : vector<2x16x1xf32> to vector<2x16x16xf32>
    %141 = arith.mulf %136, %140 : vector<2x16x16xf32>
    %142 = arith.truncf %141 : vector<2x16x16xf32> to vector<2x16x16xbf16>
    "tpu.trace_start"() <{level = 10 : i32, message = "bqk,bkd->bqd"}> : () -> ()
    %cst_105 = arith.constant dense<0.000000e+00> : vector<2x16x16xf32>
    %143 = tpu.matmul %142, %128, %cst_105 {dimension_numbers = #tpu.dot_dimension_numbers<[2], [1], [1], [2], [0, 0, 0, 1, 1, 2], [0], [0]>} : vector<2x16x16xbf16>, vector<2x16x16xbf16>, vector<2x16x16xf32> -> vector<2x16x16xf32>
    "tpu.trace_stop"() : () -> ()
    %144 = arith.truncf %143 : vector<2x16x16xf32> to vector<2x16x16xbf16>
    %145 = vector.shape_cast %144 : vector<2x16x16xbf16> to vector<32x16xbf16>
    %c0_106 = arith.constant 0 : index
    %c2_107 = arith.constant 2 : index
    %c0_108 = arith.constant 0 : index
    %c0_109 = arith.constant 0 : index
    %146 = vector.load %arg9[%c0_106, %c2_107, %c0_108, %c0_109] : memref<1x3x16x48xbf16, #tpu.memory_space<vmem>>, vector<1x1x16x48xbf16>
    %147 = vector.shape_cast %146 : vector<1x1x16x48xbf16> to vector<16x48xbf16>
    %cst_110 = arith.constant dense<0.000000e+00> : vector<32x48xf32>
    %148 = tpu.matmul %145, %147, %cst_110 {dimension_numbers = #tpu.dot_dimension_numbers<[1], [0], [0], [1], [0, 0, 1, 1], [], []>} : vector<32x16xbf16>, vector<16x48xbf16>, vector<32x48xf32> -> vector<32x48xf32>
    %149 = arith.addf %101, %148 : vector<32x48xf32>
    %c0_111 = arith.constant 0 : index
    %c0_112 = arith.constant 0 : index
    %c0_113 = arith.constant 0 : index
    %150 = vector.load %arg10[%c0_111, %c0_112, %c0_113] : memref<1x1x48xf32, #tpu.memory_space<vmem>>, vector<1x1x48xf32>
    %151 = vector.shape_cast %150 : vector<1x1x48xf32> to vector<1x48xf32>
    %152 = vector.broadcast %151 : vector<1x48xf32> to vector<32x48xf32>
    %153 = arith.addf %149, %152 : vector<32x48xf32>
    %154 = arith.addf %3, %153 : vector<32x48xf32>
    %c0_114 = arith.constant 0 : index
    %c0_115 = arith.constant 0 : index
    %c0_116 = arith.constant 0 : index
    %155 = vector.load %arg11[%c0_114, %c0_115, %c0_116] : memref<1x1x48xf32, #tpu.memory_space<vmem>>, vector<1x1x48xf32>
    %156 = vector.shape_cast %155 : vector<1x1x48xf32> to vector<1x48xf32>
    %c0_117 = arith.constant 0 : index
    %c0_118 = arith.constant 0 : index
    %c0_119 = arith.constant 0 : index
    %157 = vector.load %arg12[%c0_117, %c0_118, %c0_119] : memref<1x1x48xf32, #tpu.memory_space<vmem>>, vector<1x1x48xf32>
    %158 = vector.shape_cast %157 : vector<1x1x48xf32> to vector<1x48xf32>
    %cst_120 = arith.constant dense<0.000000e+00> : vector<32xf32>
    %159 = vector.multi_reduction <add>, %154, %cst_120 [1] : vector<32x48xf32> to vector<32xf32>
    %160 = vector.shape_cast %159 : vector<32xf32> to vector<32x1xf32>
    %cst_121 = arith.constant 4.800000e+01 : f32
    %161 = vector.broadcast %cst_121 : f32 to vector<32x1xf32>
    %162 = arith.divf %160, %161 : vector<32x1xf32>
    %163 = vector.broadcast %162 : vector<32x1xf32> to vector<32x48xf32>
    %164 = arith.subf %154, %163 : vector<32x48xf32>
    %165 = arith.mulf %164, %164 : vector<32x48xf32>
    %cst_122 = arith.constant dense<0.000000e+00> : vector<32xf32>
    %166 = vector.multi_reduction <add>, %165, %cst_122 [1] : vector<32x48xf32> to vector<32xf32>
    %167 = vector.shape_cast %166 : vector<32xf32> to vector<32x1xf32>
    %cst_123 = arith.constant 4.800000e+01 : f32
    %168 = vector.broadcast %cst_123 : f32 to vector<32x1xf32>
    %169 = arith.divf %167, %168 : vector<32x1xf32>
    %cst_124 = arith.constant 9.99999974E-6 : f32
    %170 = vector.broadcast %cst_124 : f32 to vector<32x1xf32>
    %171 = arith.addf %169, %170 : vector<32x1xf32>
    %172 = math.rsqrt %171 : vector<32x1xf32>
    %173 = vector.broadcast %172 : vector<32x1xf32> to vector<32x48xf32>
    %174 = arith.mulf %164, %173 : vector<32x48xf32>
    %175 = vector.broadcast %156 : vector<1x48xf32> to vector<32x48xf32>
    %176 = arith.mulf %174, %175 : vector<32x48xf32>
    %177 = vector.broadcast %158 : vector<1x48xf32> to vector<32x48xf32>
    %178 = arith.addf %176, %177 : vector<32x48xf32>
    %179 = arith.truncf %178 : vector<32x48xf32> to vector<32x48xbf16>
    %c0_125 = arith.constant 0 : index
    %c0_126 = arith.constant 0 : index
    %c0_127 = arith.constant 0 : index
    %180 = vector.load %arg13[%c0_125, %c0_126, %c0_127] : memref<1x48x64xbf16, #tpu.memory_space<vmem>>, vector<1x48x64xbf16>
    %181 = vector.shape_cast %180 : vector<1x48x64xbf16> to vector<48x64xbf16>
    %cst_128 = arith.constant dense<0.000000e+00> : vector<32x64xf32>
    %182 = tpu.matmul %179, %181, %cst_128 {dimension_numbers = #tpu.dot_dimension_numbers<[1], [0], [0], [1], [0, 0, 1, 1], [], []>} : vector<32x48xbf16>, vector<48x64xbf16>, vector<32x64xf32> -> vector<32x64xf32>
    %c0_129 = arith.constant 0 : index
    %c0_130 = arith.constant 0 : index
    %c0_131 = arith.constant 0 : index
    %183 = vector.load %arg14[%c0_129, %c0_130, %c0_131] : memref<1x1x64xf32, #tpu.memory_space<vmem>>, vector<1x1x64xf32>
    %184 = vector.shape_cast %183 : vector<1x1x64xf32> to vector<1x64xf32>
    %185 = vector.broadcast %184 : vector<1x64xf32> to vector<32x64xf32>
    %186 = arith.addf %182, %185 : vector<32x64xf32>
    %cst_132 = arith.constant 0.000000e+00 : f32
    %187 = vector.broadcast %cst_132 : f32 to vector<32x64xf32>
    %188 = arith.maximumf %186, %187 : vector<32x64xf32>
    %189 = arith.truncf %188 : vector<32x64xf32> to vector<32x64xbf16>
    %c0_133 = arith.constant 0 : index
    %c0_134 = arith.constant 0 : index
    %c0_135 = arith.constant 0 : index
    %190 = vector.load %arg15[%c0_133, %c0_134, %c0_135] : memref<1x64x48xbf16, #tpu.memory_space<vmem>>, vector<1x64x48xbf16>
    %191 = vector.shape_cast %190 : vector<1x64x48xbf16> to vector<64x48xbf16>
    %cst_136 = arith.constant dense<0.000000e+00> : vector<32x48xf32>
    %192 = tpu.matmul %189, %191, %cst_136 {dimension_numbers = #tpu.dot_dimension_numbers<[1], [0], [0], [1], [0, 0, 1, 1], [], []>} : vector<32x64xbf16>, vector<64x48xbf16>, vector<32x48xf32> -> vector<32x48xf32>
    %c0_137 = arith.constant 0 : index
    %c0_138 = arith.constant 0 : index
    %c0_139 = arith.constant 0 : index
    %193 = vector.load %arg16[%c0_137, %c0_138, %c0_139] : memref<1x1x48xf32, #tpu.memory_space<vmem>>, vector<1x1x48xf32>
    %194 = vector.shape_cast %193 : vector<1x1x48xf32> to vector<1x48xf32>
    %195 = vector.broadcast %194 : vector<1x48xf32> to vector<32x48xf32>
    %196 = arith.addf %192, %195 : vector<32x48xf32>
    %197 = arith.addf %178, %196 : vector<32x48xf32>
    %c0_140 = arith.constant 0 : index
    %c0_141 = arith.constant 0 : index
    %c0_142 = arith.constant 0 : index
    %198 = vector.load %arg17[%c0_140, %c0_141, %c0_142] : memref<1x1x48xf32, #tpu.memory_space<vmem>>, vector<1x1x48xf32>
    %199 = vector.shape_cast %198 : vector<1x1x48xf32> to vector<1x48xf32>
    %c0_143 = arith.constant 0 : index
    %c0_144 = arith.constant 0 : index
    %c0_145 = arith.constant 0 : index
    %200 = vector.load %arg18[%c0_143, %c0_144, %c0_145] : memref<1x1x48xf32, #tpu.memory_space<vmem>>, vector<1x1x48xf32>
    %201 = vector.shape_cast %200 : vector<1x1x48xf32> to vector<1x48xf32>
    %cst_146 = arith.constant dense<0.000000e+00> : vector<32xf32>
    %202 = vector.multi_reduction <add>, %197, %cst_146 [1] : vector<32x48xf32> to vector<32xf32>
    %203 = vector.shape_cast %202 : vector<32xf32> to vector<32x1xf32>
    %cst_147 = arith.constant 4.800000e+01 : f32
    %204 = vector.broadcast %cst_147 : f32 to vector<32x1xf32>
    %205 = arith.divf %203, %204 : vector<32x1xf32>
    %206 = vector.broadcast %205 : vector<32x1xf32> to vector<32x48xf32>
    %207 = arith.subf %197, %206 : vector<32x48xf32>
    %208 = arith.mulf %207, %207 : vector<32x48xf32>
    %cst_148 = arith.constant dense<0.000000e+00> : vector<32xf32>
    %209 = vector.multi_reduction <add>, %208, %cst_148 [1] : vector<32x48xf32> to vector<32xf32>
    %210 = vector.shape_cast %209 : vector<32xf32> to vector<32x1xf32>
    %cst_149 = arith.constant 4.800000e+01 : f32
    %211 = vector.broadcast %cst_149 : f32 to vector<32x1xf32>
    %212 = arith.divf %210, %211 : vector<32x1xf32>
    %cst_150 = arith.constant 9.99999974E-6 : f32
    %213 = vector.broadcast %cst_150 : f32 to vector<32x1xf32>
    %214 = arith.addf %212, %213 : vector<32x1xf32>
    %215 = math.rsqrt %214 : vector<32x1xf32>
    %216 = vector.broadcast %215 : vector<32x1xf32> to vector<32x48xf32>
    %217 = arith.mulf %207, %216 : vector<32x48xf32>
    %218 = vector.broadcast %199 : vector<1x48xf32> to vector<32x48xf32>
    %219 = arith.mulf %217, %218 : vector<32x48xf32>
    %220 = vector.broadcast %201 : vector<1x48xf32> to vector<32x48xf32>
    %221 = arith.addf %219, %220 : vector<32x48xf32>
    %c0_151 = arith.constant 0 : index
    %c0_152 = arith.constant 0 : index
    %222 = vector.load %arg22[%c0_151, %c0_152] : memref<32x48xf32, #tpu.memory_space<vmem>>, vector<32x48xf32>
    tpu.vector_store %arg22[%c0_151, %c0_152], %221 {strides = array<i32>} : memref<32x48xf32, #tpu.memory_space<vmem>>, vector<32x48xf32>,
    %c1_i32 = arith.constant 1 : i32
    %223 = arith.cmpi eq, %arg1, %c1_i32 : i32
    %224 = arith.extui %223 : i1 to i32
    %c0_i32_153 = arith.constant 0 : i32
    %225 = arith.cmpi ne, %224, %c0_i32_153 : i32
    scf.if %225 {
      %226 = arith.truncf %221 : vector<32x48xf32> to vector<32x48xbf16>
      %c0_154 = arith.constant 0 : index
      %c0_155 = arith.constant 0 : index
      %227 = vector.load %arg19[%c0_154, %c0_155] : memref<48x2xbf16, #tpu.memory_space<vmem>>, vector<48x2xbf16>
      %cst_156 = arith.constant dense<0.000000e+00> : vector<32x2xf32>
      %228 = tpu.matmul %226, %227, %cst_156 {dimension_numbers = #tpu.dot_dimension_numbers<[1], [0], [0], [1], [0, 0, 1, 1], [], []>} : vector<32x48xbf16>, vector<48x2xbf16>, vector<32x2xf32> -> vector<32x2xf32>
      %c0_157 = arith.constant 0 : index
      %c0_158 = arith.constant 0 : index
      %229 = vector.load %arg20[%c0_157, %c0_158] : memref<1x2xf32, #tpu.memory_space<vmem>>, vector<1x2xf32>
      %230 = vector.broadcast %229 : vector<1x2xf32> to vector<32x2xf32>
      %231 = arith.addf %228, %230 : vector<32x2xf32>
      %cst_159 = arith.constant 0.000000e+00 : f32
      %232 = vector.broadcast %cst_159 : f32 to vector<32x2xf32>
      %233 = arith.subf %232, %231 : vector<32x2xf32>
      %234 = math.exp %233 : vector<32x2xf32>
      %cst_160 = arith.constant 1.000000e+00 : f32
      %235 = vector.broadcast %cst_160 : f32 to vector<32x2xf32>
      %236 = arith.addf %235, %234 : vector<32x2xf32>
      %cst_161 = arith.constant 1.000000e+00 : f32
      %237 = vector.broadcast %cst_161 : f32 to vector<32x2xf32>
      %238 = arith.divf %237, %236 : vector<32x2xf32>
      %c0_162 = arith.constant 0 : index
      %c0_163 = arith.constant 0 : index
      %239 = vector.load %arg21[%c0_162, %c0_163] : memref<32x2xf32, #tpu.memory_space<vmem>>, vector<32x2xf32>
      tpu.vector_store %arg21[%c0_162, %c0_163], %238 {strides = array<i32>} : memref<32x2xf32, #tpu.memory_space<vmem>>, vector<32x2xf32>,
    } else {
    }
    return
  }
  func.func @transform_0(%arg0: i32, %arg1: i32) -> (i32, i32) {
    %c0_i32 = arith.constant 0 : i32
    %c0_i32_0 = arith.constant 0 : i32
    return %arg0, %c0_i32 : i32, i32
  }
  func.func @transform_1(%arg0: i32, %arg1: i32) -> (i32, i32, i32, i32) {
    %c0_i32 = arith.constant 0 : i32
    %c0_i32_0 = arith.constant 0 : i32
    %c0_i32_1 = arith.constant 0 : i32
    %c0_i32_2 = arith.constant 0 : i32
    return %arg1, %c0_i32, %c0_i32_0, %c0_i32_1 : i32, i32, i32, i32
  }
  func.func @transform_2(%arg0: i32, %arg1: i32) -> (i32, i32, i32, i32) {
    %c0_i32 = arith.constant 0 : i32
    %c0_i32_0 = arith.constant 0 : i32
    %c0_i32_1 = arith.constant 0 : i32
    %c0_i32_2 = arith.constant 0 : i32
    return %arg1, %c0_i32, %c0_i32_0, %c0_i32_1 : i32, i32, i32, i32
  }
  func.func @transform_3(%arg0: i32, %arg1: i32) -> (i32, i32, i32, i32) {
    %c0_i32 = arith.constant 0 : i32
    %c0_i32_0 = arith.constant 0 : i32
    %c0_i32_1 = arith.constant 0 : i32
    %c0_i32_2 = arith.constant 0 : i32
    return %arg1, %c0_i32, %c0_i32_0, %c0_i32_1 : i32, i32, i32, i32
  }
  func.func @transform_4(%arg0: i32, %arg1: i32) -> (i32, i32, i32, i32) {
    %c0_i32 = arith.constant 0 : i32
    %c0_i32_0 = arith.constant 0 : i32
    %c0_i32_1 = arith.constant 0 : i32
    %c0_i32_2 = arith.constant 0 : i32
    return %arg1, %c0_i32, %c0_i32_0, %c0_i32_1 : i32, i32, i32, i32
  }
  func.func @transform_5(%arg0: i32, %arg1: i32) -> (i32, i32, i32, i32) {
    %c0_i32 = arith.constant 0 : i32
    %c0_i32_0 = arith.constant 0 : i32
    %c0_i32_1 = arith.constant 0 : i32
    %c0_i32_2 = arith.constant 0 : i32
    return %arg1, %c0_i32, %c0_i32_0, %c0_i32_1 : i32, i32, i32, i32
  }
  func.func @transform_6(%arg0: i32, %arg1: i32) -> (i32, i32, i32, i32) {
    %c0_i32 = arith.constant 0 : i32
    %c0_i32_0 = arith.constant 0 : i32
    %c0_i32_1 = arith.constant 0 : i32
    %c0_i32_2 = arith.constant 0 : i32
    return %arg1, %c0_i32, %c0_i32_0, %c0_i32_1 : i32, i32, i32, i32
  }
  func.func @transform_7(%arg0: i32, %arg1: i32) -> (i32, i32, i32, i32) {
    %c0_i32 = arith.constant 0 : i32
    %c0_i32_0 = arith.constant 0 : i32
    %c0_i32_1 = arith.constant 0 : i32
    %c0_i32_2 = arith.constant 0 : i32
    return %arg1, %c0_i32, %c0_i32_0, %c0_i32_1 : i32, i32, i32, i32
  }
  func.func @transform_8(%arg0: i32, %arg1: i32) -> (i32, i32, i32) {
    %c0_i32 = arith.constant 0 : i32
    %c0_i32_0 = arith.constant 0 : i32
    %c0_i32_1 = arith.constant 0 : i32
    return %arg1, %c0_i32, %c0_i32_0 : i32, i32, i32
  }
  func.func @transform_9(%arg0: i32, %arg1: i32) -> (i32, i32, i32) {
    %c0_i32 = arith.constant 0 : i32
    %c0_i32_0 = arith.constant 0 : i32
    %c0_i32_1 = arith.constant 0 : i32
    return %arg1, %c0_i32, %c0_i32_0 : i32, i32, i32
  }
  func.func @transform_10(%arg0: i32, %arg1: i32) -> (i32, i32, i32) {
    %c0_i32 = arith.constant 0 : i32
    %c0_i32_0 = arith.constant 0 : i32
    %c0_i32_1 = arith.constant 0 : i32
    return %arg1, %c0_i32, %c0_i32_0 : i32, i32, i32
  }
  func.func @transform_11(%arg0: i32, %arg1: i32) -> (i32, i32, i32) {
    %c0_i32 = arith.constant 0 : i32
    %c0_i32_0 = arith.constant 0 : i32
    %c0_i32_1 = arith.constant 0 : i32
    return %arg1, %c0_i32, %c0_i32_0 : i32, i32, i32
  }
  func.func @transform_12(%arg0: i32, %arg1: i32) -> (i32, i32, i32) {
    %c0_i32 = arith.constant 0 : i32
    %c0_i32_0 = arith.constant 0 : i32
    %c0_i32_1 = arith.constant 0 : i32
    return %arg1, %c0_i32, %c0_i32_0 : i32, i32, i32
  }
  func.func @transform_13(%arg0: i32, %arg1: i32) -> (i32, i32, i32) {
    %c0_i32 = arith.constant 0 : i32
    %c0_i32_0 = arith.constant 0 : i32
    %c0_i32_1 = arith.constant 0 : i32
    return %arg1, %c0_i32, %c0_i32_0 : i32, i32, i32
  }
  func.func @transform_14(%arg0: i32, %arg1: i32) -> (i32, i32, i32) {
    %c0_i32 = arith.constant 0 : i32
    %c0_i32_0 = arith.constant 0 : i32
    %c0_i32_1 = arith.constant 0 : i32
    return %arg1, %c0_i32, %c0_i32_0 : i32, i32, i32
  }
  func.func @transform_15(%arg0: i32, %arg1: i32) -> (i32, i32, i32) {
    %c0_i32 = arith.constant 0 : i32
    %c0_i32_0 = arith.constant 0 : i32
    %c0_i32_1 = arith.constant 0 : i32
    return %arg1, %c0_i32, %c0_i32_0 : i32, i32, i32
  }
  func.func @transform_16(%arg0: i32, %arg1: i32) -> (i32, i32, i32) {
    %c0_i32 = arith.constant 0 : i32
    %c0_i32_0 = arith.constant 0 : i32
    %c0_i32_1 = arith.constant 0 : i32
    return %arg1, %c0_i32, %c0_i32_0 : i32, i32, i32
  }
  func.func @transform_17(%arg0: i32, %arg1: i32) -> (i32, i32) {
    %c0_i32 = arith.constant 0 : i32
    %c0_i32_0 = arith.constant 0 : i32
    %c0_i32_1 = arith.constant 0 : i32
    return %c0_i32, %c0_i32_0 : i32, i32
  }
  func.func @transform_18(%arg0: i32, %arg1: i32) -> (i32, i32) {
    %c0_i32 = arith.constant 0 : i32
    %c0_i32_0 = arith.constant 0 : i32
    %c0_i32_1 = arith.constant 0 : i32
    return %c0_i32, %c0_i32_0 : i32, i32
  }
  func.func @transform_19(%arg0: i32, %arg1: i32) -> (i32, i32) {
    %c0_i32 = arith.constant 0 : i32
    %c0_i32_0 = arith.constant 0 : i32
    return %arg0, %c0_i32 : i32, i32
  }
}

</mosaic_0001>

<bundles_post_ra>
// kernel: tpu_custom_call.1
= control target key start
LH: loop header
LB: loop body
LE: loop exit
PB: predicated region body
PF: predicated region fallthrough
CT: control target
= control target key end

     0   :  { %s4031_s30 = smov 0   ;;  %s4033_s20 = smov 0   ;;  %s4448_s0 = inlined_call_operand.vmem [shape: f32[32,48], index: 0, kind: input, shape index: {}]   ;;  %s4449_s1 = inlined_call_operand.vmem [shape: bf16[2,3,48,16], index: 1, kind: input, shape index: {}]   ;;  %s4450_s2 = inlined_call_operand.vmem [shape: f32[2,3,1,16], index: 2, kind: input, shape index: {}]   ;;  %s4451_s3 = inlined_call_operand.vmem [shape: bf16[2,3,48,16], index: 3, kind: input, shape index: {}]   ;;  %s4452_s4 = inlined_call_operand.vmem [shape: f32[2,3,1,16], index: 4, kind: input, shape index: {}]   ;;  %s4453_s5 = inlined_call_operand.vmem [shape: bf16[2,3,48,16], index: 5, kind: input, shape index: {}]   ;;  %s4454_s6 = inlined_call_operand.vmem [shape: f32[2,3,1,16], index: 6, kind: input, shape index: {}]   ;;  %s4455_s7 = inlined_call_operand.vmem [shape: bf16[2,3,16,48], index: 7, kind: input, shape index: {}]   ;;  %s4456_s8 = inlined_call_operand.vmem [shape: f32[2,1,48], index: 8, kind: input, shape index: {}]   ;;  %s4457_s9 = inlined_call_operand.vmem [shape: f32[2,1,48], index: 9, kind: input, shape index: {}]   ;;  %s4458_s10 = inlined_call_operand.vmem [shape: f32[2,1,48], index: 10, kind: input, shape index: {}]   ;;  %s4459_s11 = inlined_call_operand.vmem [shape: bf16[2,48,64], index: 11, kind: input, shape index: {}]   ;;  %s4460_s12 = inlined_call_operand.vmem [shape: f32[2,1,64], index: 12, kind: input, shape index: {}]   ;;  %s4461_s13 = inlined_call_operand.vmem [shape: bf16[2,64,48], index: 13, kind: input, shape index: {}]   ;;  %s4462_s14 = inlined_call_operand.vmem [shape: f32[2,1,48], index: 14, kind: input, shape index: {}]   ;;  %s4463_s15 = inlined_call_operand.vmem [shape: f32[2,1,48], index: 15, kind: input, shape index: {}]   ;;  %s4464_s16 = inlined_call_operand.vmem [shape: f32[2,1,48], index: 16, kind: input, shape index: {}]   ;;  %s4465_s17 = inlined_call_operand.vmem [shape: bf16[48,2], index: 17, kind: input, shape index: {}]   ;;  %s4466_s18 = inlined_call_operand.vmem [shape: f32[1,2], index: 18, kind: input, shape index: {}]   ;;  %s4467_s19 = inlined_call_operand.vmem [shape: f32[32,2], index: 19, kind: output, shape index: {}]  }
   0x1   :  { %4476 = sst [smem:[#allocation9_spill]] %s4448_s0  ;;  %s4029_s0 = smov 0  }
   0x2   :  { %4477 = sst [smem:[#allocation10_spill]] %s4449_s1 }
   0x3   :  { %4478 = sst [smem:[#allocation11_spill]] %s4450_s2 }
   0x4   :  { %4479 = sst [smem:[#allocation12_spill]] %s4451_s3 }
   0x5   :  { %4480 = sst [smem:[#allocation13_spill]] %s4452_s4 }
   0x6   :  { %4481 = sst [smem:[#allocation14_spill]] %s4453_s5 }
   0x7   :  { %4482 = sst [smem:[#allocation15_spill]] %s4454_s6 }
   0x8   :  { %4483 = sst [smem:[#allocation16_spill]] %s4456_s8 }
   0x9   :  { %4484 = sst [smem:[#allocation17_spill]] %s4457_s9 }
   0xa   :  { %4485 = sst [smem:[#allocation18_spill]] %s4465_s17 }
   0xb   :  { %4486 = sst [smem:[#allocation19_spill]] %s4466_s18 }
   0xc   :  { %4487 = sst [smem:[#allocation20_spill]] %s4467_s19 }
   0xd LB: > { %4488 = sst [smem:[#allocation3_spill]] %s3917_s0  ;;  %s38_s21 = sadd.s32 1, %s3921_s30  ;;  %s3925_s20 = sphi %s4033_s20, %s29_s20   ;;  %s3921_s30 = sphi %s4031_s30, %s4519_s30   ;;  %s3917_s0 = sphi %s4029_s0, %s4518_s0  }
   0xe   : > { %4489 = sst [smem:[#allocation4_spill]] %s3921_s30  ;;  %p3284_p0 = scmp.ge.s32.totalorder %s3925_s20, 1 }
   0xf   : > { %4490 = sst [smem:[#allocation5_spill]] %s3925_s20  ;;  %p39_p1 = scmp.ge.s32.totalorder %s38_s21, 2 }
  0x10   : > { %p693_p2 = scmp.lt.s32.totalorder %s3925_s20, 3 }
  0x11   : > { %s4521_s21 = smov (%p39_p1, %s38_s21), 0 }
  0x12   : > { %4491 = sst [smem:[#allocation6_spill]] %s4521_s21  ;;  %p694_p3 = pnand %p3284_p0, %p693_p2 }
  0x14   : > { %697 = sbr.rel (%p694_p3) target bundleno = 4157 (0x103d), region = 96 }
  0x19   : > { %p818_p4 = scmp.lt.s32.totalorder %s3917_s0, 1  ;;  %s4494_s21 = sld [smem:[#allocation10_spill]] }
  0x1a   : > { %s4495_s18 = sld [smem:[#allocation12_spill]] }
  0x1b   : > { %s4051_s1 = scalar_select %p818_p4, %s3917_s0, 1 }
  0x1c   : > { %s4496_s24 = sld [smem:[#allocation11_spill]] }
  0x1d   : > { %s3750_s22 = smul.u32 72, %s4051_s1  ;;  %s4498_s4 = sld [smem:[#allocation13_spill]] }
  0x1e   : > { %s3751_s25 = smul.u32 3, %s4051_s1  ;;  %s4500_s5 = sld [smem:[#allocation14_spill]] }
  0x1f   : > { %s4066_s30 = scalar_lea.vmem %s4494_s21, %s3750_s22  ;;  %s4501_s6 = sld [smem:[#allocation15_spill]] }
  0x20   : > { %s4071_s17 = scalar_lea.vmem %s4495_s18, %s3750_s22  ;;  %s3752_s19 = smul.u32 24, %s4051_s1 }
  0x21   : > { %s3443_s3 = sshll.u32 %s4051_s1, 5  ;;  %s4502_s27 = sld [smem:[#allocation3_spill]] }
  0x22   : > { %s4076_s8 = scalar_lea.vmem %s4496_s24, %s3751_s25  ;;  %s4111_s9 = scalar_lea.vmem %s4459_s11, %s3752_s19 }
  0x23   : > { %4497 = sst [smem:[#allocation7_spill]] %s4076_s8  ;;  %s4081_s26 = scalar_lea.vmem %s4498_s4, %s3751_s25 }
  0x24   : > { %4499 = sst [smem:[#allocation8_spill]] %s4081_s26  ;;  %s4086_s21 = scalar_lea.vmem %s4500_s5, %s3750_s22 }
  0x25   : > { %s4091_s18 = scalar_lea.vmem %s4501_s6, %s3751_s25  ;;  %s4106_s22 = scalar_lea.vmem %s4455_s7, %s3752_s19 }
  0x26   : > { %s4116_s20 = scalar_lea.vmem %s4461_s13, %s3443_s3  ;;  %s874_s8 = scalar_lea.vmem %s4462_s14, %s4051_s1 }
  0x27   : > { %s877_s4 = scalar_lea.vmem %s4463_s15, %s4051_s1  ;;  %s880_s6 = scalar_lea.vmem %s4464_s16, %s4051_s1 }
  0x28   : > { %p3292_p5 = scmp.ne.s32.totalorder %s4502_s27, 0 }
  0x29   : > { %s4503_s25 = sld [smem:[#allocation9_spill]] (!%p3292_p5) }
  0x2a   : > { %891 = sbr.rel (%p3292_p5) target bundleno = 50 (0x32), region = 100 }
  0x2f   : > { %v892_v0 = vld [vmem:[%s4503_s25] sm:$0xff]  ;;  %vm896_vm0 = vcmask 392192   ;;  %v893_v1 = vld [vmem:[%s4503_s25 + $0x8] sm:$0xff]  ;;  %v894_v2 = vld [vmem:[%s4503_s25 + $0x10] sm:$0xff] }
  0x30   : > { %897 = vst.msk [vmem:[#allocation2] sm:$0xff] %vm896_vm0, %v892_v0  ;;  %898 = vst.msk [vmem:[#allocation2 + $0x8] sm:$0xff] %vm896_vm0, %v893_v1  ;;  %v895_v3 = vld [vmem:[%s4503_s25 + $0x18] sm:$0xff] }
  0x31   : > { %899 = vst.msk [vmem:[#allocation2 + $0x10] sm:$0xff] %vm896_vm0, %v894_v2  ;;  %900 = vst.msk [vmem:[#allocation2 + $0x18] sm:$0xff] %vm896_vm0, %v895_v3 }
  0x32 PF: > { %v3779_v4 = vld [vmem:[%s4071_s17 + $0x10] sm:$0xff]   ;;  %v3781_v6 = vld [vmem:[%s4071_s17 + $0x8] sm:$0xff]   ;;  %v3783_v8 = vld [vmem:[%s4071_s17] sm:$0xff]   ;;  %vm938_vm1 = vcmask 392192   ;;  %s4504_s23 = sld [smem:[#allocation8_spill]]  ;;  %v3927_v16 = vmov 0.0   ;;  %s4510_s29 = scalar_lea.vmem %s4458_s10, %s4051_s1 }
  0x33   : > { %v3780_v5 = vld [vmem:[%s4066_s30 + $0x10] sm:$0xff]   ;;  %3548 = vmatprep.subr.bf16.mxu1 %v3779_v4  ;;  %v3782_v7 = vld [vmem:[%s4066_s30 + $0x8] sm:$0xff]   ;;  %v3784_v9 = vld [vmem:[%s4066_s30] sm:$0xff]   ;;  %s4505_s26 = sld [smem:[#allocation7_spill]]  ;;  %vm3928_vm2 = vmmov 0   ;;  %vm1160_vm3 = vcmask 130048   ;;  %s4511_s5 = scalar_lea.vmem %s4460_s12, %s4051_s1 }
  0x34   : > { %3549 = vmatpush3.bf16.msra.mxu1 %v3779_v4  ;;  %3538 = vmatprep.subr.bf16.mxu0 %v3780_v5  ;;  %v3785_v41 = vld [vmem:[%s4086_s21 + $0x10] sm:$0xff]   ;;  %v3786_v42 = vld [vmem:[%s4086_s21 + $0x8] sm:$0xff]   ;;  %v3787_v43 = vld [vmem:[%s4086_s21] sm:$0xff]   ;;  %s4508_s27 = sld [smem:[#allocation17_spill]]  ;;  %vm2785_vm4 = vcmask 523264  }
  0x35   : > { %3539 = vmatpush3.bf16.msra.mxu0 %v3780_v5  ;;  %3550 = vmatprep.subr.bf16.mxu1 %v3781_v6 }
  0x36   : > { %3540 = vmatprep.subr.bf16.mxu0 %v3782_v7 }
  0x37   : > { %v901_v10 = vld [vmem:[#allocation2] sm:$0xff]  ;;  %v902_v11 = vld [vmem:[#allocation2 + $0x8] sm:$0xff] }
  0x38   : > { %v903_v12 = vld [vmem:[#allocation2 + $0x10] sm:$0xff]  ;;  %3551 = vmatpush3.bf16.msra.mxu1 %v3781_v6  ;;  %v4149_v13 = vpack.c.bf16 %v902_v11, %v901_v10  ;;  %v904_v14 = vld [vmem:[#allocation2 + $0x18] sm:$0xff]  ;;  %v3299_v22 = vld [vmem:[%s4504_s23] ss:$0 sm:$0xff] }
  0x39   : > { %3541 = vmatpush3.bf16.msra.mxu0 %v3782_v7  ;;  %3552 = vmatprep.subr.bf16.mxu1 %v3783_v8  ;;  %v4153_v15 = vpack.c.bf16 %v904_v14, %v903_v12  ;;  %v3293_v28 = vld [vmem:[%s4505_s26] ss:$0 sm:$0xff] }
  0x3a   : > { %3542 = vmatprep.subr.bf16.mxu0 %v3784_v9  ;;  %3554 = vmatprep.mubr.msk.bf16.mxu1 %vm938_vm1, %v4149_v13  ;;  %s4509_s19 = scalar_lea.vmem %s4508_s27, %s4051_s1 }
  0x3b   : > { %3544 = vmatprep.mubr.msk.bf16.mxu0 %vm938_vm1, %v4149_v13 }
  0x3c   : > { %3553 = vmatpush3.bf16.msra.mxu1 %v3783_v8 }
  0x3d   : > { %3543 = vmatpush3.bf16.msra.mxu0 %v3784_v9  ;;  %3568 = vmatprep.subr.bf16.mxu1 %v3927_v16 }
  0x3e   : > { %3558 = vmatprep.subr.bf16.mxu0 %v3785_v41 }
  0x3f   : > { %3555 = vmatmul.mubr.msk.bf16.vlgmr.msra.gmra.mxu1 %vm938_vm1, %v4153_v15 }
  0x40   : > { %3545 = vmatmul.mubr.msk.bf16.vlgmr.msra.gmra.mxu0 %vm938_vm1, %v4153_v15  ;;  %3570 = vmatprep.mubr.msk.bf16.mxu1 %vm3928_vm2, %v3927_v16 }
  0x41   : > { %3564 = vmatprep.mubr.msk.bf16.mxu0 %vm938_vm1, %v4149_v13  ;;  %3559 = vmatpush3.bf16.msra.mxu0 %v3785_v41 }
  0x42   : > { %3560 = vmatprep.subr.bf16.mxu0 %v3786_v42 }
  0x45   : > { %3561 = vmatpush3.bf16.msra.mxu0 %v3786_v42  ;;  %v3790_v42 = vld [vmem:[%s4071_s17 + $0x20] sm:$0xff]  }
  0x46   : > { %3562 = vmatprep.subr.bf16.mxu0 %v3787_v43 }
  0x49   : > { %3563 = vmatpush3.bf16.msra.mxu0 %v3787_v43 }
  0x4a   : > { %3580 = vmatprep.subr.bf16.mxu0 %v3927_v16 }
  0x4c   : > { %3565 = vmatmul.mubr.msk.bf16.vlgmr.msra.gmra.mxu0 %vm938_vm1, %v4153_v15 }
  0x4d   : > { %3582 = vmatprep.mubr.msk.bf16.mxu0 %vm3928_vm2, %v3927_v16 }
  0xff   : > { %v3556_v17 = vpop.f32.mrf.mxu1 }
 0x100   : > { %v3546_v18 = vpop.f32.mrf.mxu0  ;;  %v1068_v32 = vadd.f32 %v3556_v17, %v3299_v22 }
 0x101   : > { %v1059_v19 = vpop.f32.mrf.mxu1  ;;  %v988_v38 = vadd.f32 %v3546_v18, %v3293_v28 }
 0x102   : > { %v979_v20 = vpop.f32.mrf.mxu0  ;;  %v1060_v25 = vadd.f32 %v3299_v22, %v1059_v19 }
 0x103   : > { %v3557_v21 = vpop.f32.mrf.mxu1  ;;  %v980_v33 = vadd.f32 %v3293_v28, %v979_v20  ;;  %v3305_v20 = vld [vmem:[%s4091_s18] ss:$0 sm:$0xff] }
 0x104   : > { %v3547_v23 = vpop.f32.mrf.mxu0  ;;  %v1071_v30 = vadd.f32 %v3557_v21, %v3299_v22 }
 0x105   : > { %v1062_v24 = vpop.f32.mrf.mxu1  ;;  %v991_v39 = vadd.f32 %v3547_v23, %v3293_v28 }
 0x106   : > { %v1063_v26 = vadd.f32 %v3299_v22, %v1062_v24  ;;  %v982_v29 = vpop.f32.mrf.mxu0  ;;  %v1157_v35 = vpack.c.bf16 %v1071_v30, %v1068_v32 }
 0x107   : > { %v983_v34 = vadd.f32 %v3293_v28, %v982_v29  ;;  %v1155_v40 = vpack.c.bf16 %v991_v39, %v988_v38  ;;  %v3788_v29 = vld [vmem:[%s4071_s17 + $0x28] sm:$0xff]  }
 0x108   : > { %v1156_v27 = vpack.c.bf16 %v1063_v26, %v1060_v25  ;;  %v1212_v37 = vsel %vm1160_vm3, %v1157_v35, 0 }
 0x109   : > { %v1154_v36 = vpack.c.bf16 %v983_v34, %v980_v33 }
 0x10a   : > { %v1165_v31 = vsel %vm1160_vm3, %v1156_v27, 0 }
 0x10b   : > { %3569 = vmatpush3.bf16.xpose.msra.mxu1 %v1165_v31  ;;  %v3789_v31 = vld [vmem:[%s4066_s30 + $0x28] sm:$0xff]  }
 0x10c   : > { %3574 = vmatprep.subr.bf16.mxu1 %v3927_v16  ;;  %v3566_v19 = vpop.f32.mrf.mxu0 }
 0x10d   : > { %v1148_v22 = vadd.f32 %v3566_v19, %v3305_v20 }
 0x10e   : > { %v1139_v21 = vpop.f32.mrf.mxu0 }
 0x10f   : > { %v1140_v24 = vadd.f32 %v3305_v20, %v1139_v21 }
 0x110   : > { %v3567_v23 = vpop.f32.mrf.mxu0 }
 0x111   : > { %v1151_v25 = vadd.f32 %v3567_v23, %v3305_v20 }
 0x112   : > { %3571 = vmatmul.mubr.msk.bf16.vlgmr.msra.gmra.mxu1 %vm1160_vm3, %v1154_v36  ;;  %v1142_v26 = vpop.f32.mrf.mxu0 }
 0x113   : > { %3575 = vmatpush3.bf16.xpose.msra.mxu1 %v1212_v37  ;;  %3576 = vmatprep.mubr.msk.bf16.mxu1 %vm3928_vm2, %v3927_v16  ;;  %v1159_v27 = vpack.c.bf16 %v1151_v25, %v1148_v22  ;;  %v1143_v28 = vadd.f32 %v3305_v20, %v1142_v26 }
 0x114   : > { %3586 = vmatprep.subr.bf16.mxu1 %v3927_v16 }
 0x115   : > { %v1158_v30 = vpack.c.bf16 %v1143_v28, %v1140_v24 }
 0x117   : > { %3581 = vmatpush3.bf16.msra.mxu0 %v1158_v30 }
 0x118   : > { %3592 = vmatprep.subr.bf16.mxu0 %v3789_v31 }
 0x11a   : > { %3577 = vmatmul.mubr.msk.bf16.vlgmr.msra.gmra.mxu1 %vm1160_vm3, %v1155_v40 }
 0x11b   : > { %3588 = vmatprep.mubr.msk.bf16.mxu1 %vm3928_vm2, %v3927_v16  ;;  %3587 = vmatpush3.bf16.msra.mxu1 %v1159_v27  ;;  %v3348_v27 = vld [vmem:[%s4091_s18 + $0x1] ss:$0 sm:$0xff] }
 0x11c   : > { %3602 = vmatprep.subr.bf16.mxu1 %v3788_v29 }
 0x1d2   : > { %v1201_v44 = vpop.f32.mrf.mxu1 }
 0x1d3   : > { %v1255_v45 = vmul.f32 0.25, %v1201_v44 }
 0x1d4   : > { %v3572_v46 = vpop.f32.mrf.mxu1 }
 0x1d5   : > { %v1259_v47 = vsel %vm1160_vm3, %v1255_v45, -inf }
 0x1d6   : > { %1260 = vmax.xlane.f32.xlu1 %v1259_v47  ;;  %v1204_v48 = vpop.f32.mrf.mxu1  ;;  %v3791_v47 = vld [vmem:[%s4066_s30 + $0x20] sm:$0xff]  }
 0x1d7   : > { %v1256_v49 = vmul.f32 0.25, %v1204_v48  ;;  %v3792_v48 = vld [vmem:[%s4071_s17 + $0x18] sm:$0xff]  }
 0x1d8   : > { %v3573_v50 = vpop.f32.mrf.mxu1 }
 0x1d9   : > { %v1262_v51 = vsel %vm1160_vm3, %v1256_v49, -inf  ;;  %v3794_v50 = vld [vmem:[%s4086_s21 + $0x28] sm:$0xff]  }
 0x1da   : > { %1263 = vmax.xlane.f32.xlu1 %v1262_v51  ;;  %v1248_v52 = vpop.f32.mrf.mxu1  ;;  %v3795_v51 = vld [vmem:[%s4086_s21 + $0x20] sm:$0xff]  }
 0x1db   : > { %v1257_v53 = vmul.f32 0.25, %v1248_v52  ;;  %v3796_v52 = vld [vmem:[%s4086_s21 + $0x18] sm:$0xff]  }
 0x1dc   : > { %v3578_v54 = vpop.f32.mrf.mxu1 }
 0x1dd   : > { %v1265_v55 = vsel %vm1160_vm3, %v1257_v53, -inf }
 0x1de   : > { %1266 = vmax.xlane.f32.xlu0 %v1265_v55  ;;  %v1251_v56 = vpop.f32.mrf.mxu1 }
 0x1df   : > { %v1258_v57 = vmul.f32 0.25, %v1251_v56 }
 0x1e0   : > { %v3579_v58 = vpop.f32.mrf.mxu1 }
 0x1e1   : > { %v1268_v59 = vsel %vm1160_vm3, %v1258_v57, -inf }
 0x1e2   : > { %1269 = vmax.xlane.f32.xlu0 %v1268_v59 }
 0x25f   : > { %v1261_v60 = vpop.xlane.xlu1 %1260 }
 0x260   : > { %v1271_v61 = vsub.f32 %v1255_v45, %v1261_v60 }
 0x262   : > { %v1275_v1 = vmul.f32 1.442695, %v1271_v61 }
 0x263   : > { %v1264_v62 = vpop.xlane.xlu1 %1263 }
 0x264   : > { %v1272_v2 = vsub.f32 %v1256_v49, %v1264_v62  ;;  %v3793_v49 = vld [vmem:[%s4066_s30 + $0x18] sm:$0xff]  }
 0x266   : > { %v1277_v6 = vmul.f32 1.442695, %v1272_v2 }
 0x267   : > { %v1267_v63 = vpop.xlane.xlu0 %1266 }
 0x268   : > { %v1273_v0 = vsub.f32 %v1257_v53, %v1267_v63 }
 0x26a   : > { %v1279_v3 = vmul.f32 1.442695, %v1273_v0  ;;  %v3335_v0 = vld [vmem:[%s4504_s23 + $0x1] ss:$0 sm:$0xff] }
 0x26b   : > { %v1270_v4 = vpop.xlane.xlu0 %1269 }
 0x26c   : > { %3816 = vpow2.f32 %v1279_v3  ;;  %v1274_v5 = vsub.f32 %v1258_v57, %v1270_v4 }
 0x26d   : > { %3818 = vpow2.f32 %v1275_v1 }
 0x26e   : > { %v1281_v7 = vmul.f32 1.442695, %v1274_v5 }
 0x270   : > { %3820 = vpow2.f32 %v1281_v7 }
 0x271   : > { %3822 = vpow2.f32 %v1277_v6 }
 0x279   : > { %v3817_v8 = vpop.eup %3816 }
 0x27a   : > { %v1289_v9 = vsel %vm1160_vm3, %v3817_v8, 0.0  ;;  %v3819_v10 = vpop.eup %3818 }
 0x27b   : > { %1290 = vadd.xlane.f32.xlu0 %v1289_v9  ;;  %v1283_v12 = vsel %vm1160_vm3, %v3819_v10, 0.0 }
 0x27d   : > { %v3821_v11 = vpop.eup %3820 }
 0x27e   : > { %v1292_v14 = vsel %vm1160_vm3, %v3821_v11, 0.0  ;;  %v3823_v17 = vpop.eup %3822 }
 0x27f   : > { %1284 = vadd.xlane.f32.xlu0 %v1283_v12  ;;  %1293 = vadd.xlane.f32.xlu1 %v1292_v14  ;;  %v1286_v18 = vsel %vm1160_vm3, %v3823_v17, 0.0 }
 0x283   : > { %1287 = vadd.xlane.f32.xlu1 %v1286_v18 }
 0x304   : > { %v1291_v32 = vpop.xlane.xlu0 %1290 }
 0x305   : > { %3824 = vrcp.f32 %v1291_v32 }
 0x308   : > { %v1294_v33 = vpop.xlane.xlu1 %1293  ;;  %v1285_v34 = vpop.xlane.xlu0 %1284 }
 0x309   : > { %3826 = vrcp.f32 %v1294_v33 }
 0x30a   : > { %3828 = vrcp.f32 %v1285_v34 }
 0x30c   : > { %v1288_v35 = vpop.xlane.xlu1 %1287 }
 0x30d   : > { %3830 = vrcp.f32 %v1288_v35 }
 0x312   : > { %v3825_v36 = vpop.eup %3824 }
 0x313   : > { %v1301_v38 = vmul.f32 %v3825_v36, %v3817_v8 }
 0x316   : > { %v3827_v37 = vpop.eup %3826 }
 0x317   : > { %v1302_v39 = vmul.f32 %v3827_v37, %v3821_v11  ;;  %v3829_v40 = vpop.eup %3828  ;;  %v3322_v11 = vld [vmem:[%s4505_s26 + $0x1] ss:$0 sm:$0xff] }
 0x318   : > { %v1299_v44 = vmul.f32 %v3829_v40, %v3819_v10 }
 0x319   : > { %v1304_v41 = vpack.c.bf16 %v1302_v39, %v1301_v38 }
 0x31a   : > { %v3831_v43 = vpop.eup %3830 }
 0x31b   : > { %3589 = vmatmul.mubr.msk.bf16.vlgmr.msra.gmra.mxu1 %vm1160_vm3, %v1304_v41  ;;  %v1300_v45 = vmul.f32 %v3831_v43, %v3823_v17 }
 0x31c   : > { %3603 = vmatpush3.bf16.msra.mxu1 %v3788_v29  ;;  %3608 = vmatprep.mubr.msk.bf16.mxu1 %vm938_vm1, %v4149_v13 }
 0x31d   : > { %3604 = vmatprep.subr.bf16.mxu1 %v3790_v42  ;;  %v1303_v46 = vpack.c.bf16 %v1300_v45, %v1299_v44 }
 0x31f   : > { %3583 = vmatmul.mubr.msk.bf16.vlgmr.msra.gmra.mxu0 %vm1160_vm3, %v1303_v46 }
 0x320   : > { %3593 = vmatpush3.bf16.msra.mxu0 %v3789_v31  ;;  %3605 = vmatpush3.bf16.msra.mxu1 %v3790_v42 }
 0x321   : > { %3594 = vmatprep.subr.bf16.mxu0 %v3791_v47  ;;  %3606 = vmatprep.subr.bf16.mxu1 %v3792_v48 }
 0x322   : > { %3598 = vmatprep.mubr.msk.bf16.mxu0 %vm938_vm1, %v4149_v13 }
 0x324   : > { %3595 = vmatpush3.bf16.msra.mxu0 %v3791_v47  ;;  %3607 = vmatpush3.bf16.msra.mxu1 %v3792_v48 }
 0x325   : > { %3596 = vmatprep.subr.bf16.mxu0 %v3793_v49  ;;  %3622 = vmatprep.subr.bf16.mxu1 %v3927_v16 }
 0x327   : > { %3609 = vmatmul.mubr.msk.bf16.vlgmr.msra.gmra.mxu1 %vm938_vm1, %v4153_v15 }
 0x328   : > { %3597 = vmatpush3.bf16.msra.mxu0 %v3793_v49  ;;  %3624 = vmatprep.mubr.msk.bf16.mxu1 %vm3928_vm2, %v3927_v16 }
 0x329   : > { %3612 = vmatprep.subr.bf16.mxu0 %v3794_v50 }
 0x32b   : > { %3599 = vmatmul.mubr.msk.bf16.vlgmr.msra.gmra.mxu0 %vm938_vm1, %v4153_v15 }
 0x32c   : > { %3618 = vmatprep.mubr.msk.bf16.mxu0 %vm938_vm1, %v4149_v13  ;;  %3613 = vmatpush3.bf16.msra.mxu0 %v3794_v50 }
 0x32d   : > { %3614 = vmatprep.subr.bf16.mxu0 %v3795_v51 }
 0x330   : > { %3615 = vmatpush3.bf16.msra.mxu0 %v3795_v51 }
 0x331   : > { %3616 = vmatprep.subr.bf16.mxu0 %v3796_v52 }
 0x334   : > { %3617 = vmatpush3.bf16.msra.mxu0 %v3796_v52 }
 0x335   : > { %3628 = vmatprep.subr.bf16.mxu0 %v3927_v16 }
 0x337   : > { %3619 = vmatmul.mubr.msk.bf16.vlgmr.msra.gmra.mxu0 %vm938_vm1, %v4153_v15 }
 0x338   : > { %3630 = vmatprep.mubr.msk.bf16.mxu0 %vm3928_vm2, %v3927_v16 }
 0x3db   : > { %v4224_v53 = vpop.f32.mrf.mxu1 }
 0x3dd   : > { %v3590_v54 = vpop.f32.mrf.mxu1 }
 0x3df   : > { %v4226_v55 = vpop.f32.mrf.mxu0  ;;  %v4228_v56 = vpop.f32.mrf.mxu1 }
 0x3e0   : > { %v1394_v57 = vpack.c.bf16 %v4228_v56, %v4224_v53  ;;  %v3802_v53 = vld [vmem:[%s4066_s30 + $0x40] sm:$0xff]  }
 0x3e1   : > { %v3584_v58 = vpop.f32.mrf.mxu0  ;;  %v3591_v59 = vpop.f32.mrf.mxu1 }
 0x3e3   : > { %v4232_v60 = vpop.f32.mrf.mxu0 }
 0x3e4   : > { %v1393_v61 = vpack.c.bf16 %v4232_v60, %v4226_v55 }
 0x3e5   : > { %v3585_v62 = vpop.f32.mrf.mxu0 }
 0x3e7   : > { %v3610_v63 = vpop.f32.mrf.mxu1 }
 0x3e8   : > { %v1555_v4 = vadd.f32 %v3610_v63, %v3335_v0 }
 0x3e9   : > { %v1546_v1 = vpop.f32.mrf.mxu1 }
 0x3ea   : > { %v1547_v8 = vadd.f32 %v3335_v0, %v1546_v1 }
 0x3eb   : > { %v3600_v2 = vpop.f32.mrf.mxu0  ;;  %v3611_v3 = vpop.f32.mrf.mxu1 }
 0x3ec   : > { %v1558_v5 = vadd.f32 %v3611_v3, %v3335_v0  ;;  %v1473_v19 = vadd.f32 %v3600_v2, %v3322_v11 }
 0x3ed   : > { %v1464_v6 = vpop.f32.mrf.mxu0  ;;  %v1549_v7 = vpop.f32.mrf.mxu1 }
 0x3ee   : > { %v1646_v9 = vpack.c.bf16 %v1558_v5, %v1555_v4  ;;  %v1550_v10 = vadd.f32 %v3335_v0, %v1549_v7  ;;  %v1465_v23 = vadd.f32 %v3322_v11, %v1464_v6 }
 0x3ef   : > { %v3601_v12 = vpop.f32.mrf.mxu0 }
 0x3f0   : > { %v1645_v14 = vpack.c.bf16 %v1550_v10, %v1547_v8  ;;  %v1700_v17 = vsel %vm1160_vm3, %v1646_v9, 0  ;;  %v1476_v20 = vadd.f32 %v3601_v12, %v3322_v11 }
 0x3f1   : > { %v1467_v18 = vpop.f32.mrf.mxu0  ;;  %3629 = vmatpush3.bf16.xpose.msra.mxu0 %v1700_v17 }
 0x3f2   : > { %v1653_v21 = vsel %vm1160_vm3, %v1645_v14, 0  ;;  %3640 = vmatprep.subr.bf16.mxu0 %v3927_v16  ;;  %v1468_v22 = vadd.f32 %v3322_v11, %v1467_v18  ;;  %v1644_v24 = vpack.c.bf16 %v1476_v20, %v1473_v19  ;;  %v3797_v18 = vld [vmem:[%s4106_s22] sm:$0xff]  }
 0x3f3   : > { %3623 = vmatpush3.bf16.xpose.msra.mxu1 %v1653_v21 }
 0x3f4   : > { %3634 = vmatprep.subr.bf16.mxu1 %v3927_v16  ;;  %v1643_v25 = vpack.c.bf16 %v1468_v22, %v1465_v23 }
 0x3f7   : > { %v3620_v26 = vpop.f32.mrf.mxu0 }
 0x3f8   : > { %3631 = vmatmul.mubr.msk.bf16.vlgmr.msra.gmra.mxu0 %vm1160_vm3, %v1644_v24  ;;  %v1637_v29 = vadd.f32 %v3620_v26, %v3348_v27 }
 0x3f9   : > { %3642 = vmatprep.mubr.msk.bf16.mxu0 %vm3928_vm2, %v3927_v16  ;;  %v1628_v28 = vpop.f32.mrf.mxu0 }
 0x3fa   : > { %3625 = vmatmul.mubr.msk.bf16.vlgmr.msra.gmra.mxu1 %vm1160_vm3, %v1643_v25  ;;  %v1629_v31 = vadd.f32 %v3348_v27, %v1628_v28 }
 0x3fb   : > { %3636 = vmatprep.mubr.msk.bf16.mxu1 %vm3928_vm2, %v3927_v16  ;;  %v3621_v30 = vpop.f32.mrf.mxu0 }
 0x3fc   : > { %v1640_v32 = vadd.f32 %v3621_v30, %v3348_v27 }
 0x3fd   : > { %v1631_v33 = vpop.f32.mrf.mxu0 }
 0x3fe   : > { %v1648_v34 = vpack.c.bf16 %v1640_v32, %v1637_v29  ;;  %v1632_v35 = vadd.f32 %v3348_v27, %v1631_v33  ;;  %v3798_v33 = vld [vmem:[%s4071_s17 + $0x40] sm:$0xff]  }
 0x400   : > { %v1647_v36 = vpack.c.bf16 %v1632_v35, %v1629_v31  ;;  %3641 = vmatpush3.bf16.msra.mxu0 %v1648_v34  ;;  %v3799_v34 = vld [vmem:[%s4071_s17 + $0x38] sm:$0xff]   ;;  %v3800_v35 = vld [vmem:[%s4106_s22 + $0x8] sm:$0xff]  }
 0x401   : > { %3652 = vmatprep.subr.bf16.mxu0 %v3797_v18 }
 0x402   : > { %3635 = vmatpush3.bf16.msra.mxu1 %v1647_v36  ;;  %v3801_v36 = vld [vmem:[%s4071_s17 + $0x30] sm:$0xff]  }
 0x403   : > { %3646 = vmatprep.subr.bf16.mxu1 %v3800_v35 }
 0x4b8   : > { %v1736_v37 = vpop.f32.mrf.mxu0 }
 0x4b9   : > { %v1745_v43 = vmul.f32 0.25, %v1736_v37 }
 0x4ba   : > { %v1689_v38 = vpop.f32.mrf.mxu1  ;;  %v3632_v39 = vpop.f32.mrf.mxu0 }
 0x4bb   : > { %v1743_v40 = vmul.f32 0.25, %v1689_v38  ;;  %v1753_v50 = vsel %vm1160_vm3, %v1745_v43, -inf }
 0x4bc   : > { %v3626_v41 = vpop.f32.mrf.mxu1  ;;  %v1739_v42 = vpop.f32.mrf.mxu0 }
 0x4bd   : > { %v1747_v44 = vsel %vm1160_vm3, %v1743_v40, -inf  ;;  %v1746_v49 = vmul.f32 0.25, %v1739_v42  ;;  %v3803_v41 = vld [vmem:[%s4066_s30 + $0x38] sm:$0xff]  }
 0x4be   : > { %v3633_v45 = vpop.f32.mrf.mxu0  ;;  %1748 = vmax.xlane.f32.xlu0 %v1747_v44  ;;  %v1692_v46 = vpop.f32.mrf.mxu1  ;;  %v3805_v44 = vld [vmem:[%s4086_s21 + $0x40] sm:$0xff]  }
 0x4bf   : > { %v1744_v47 = vmul.f32 0.25, %v1692_v46  ;;  %v1756_v52 = vsel %vm1160_vm3, %v1746_v49, -inf }
 0x4c0   : > { %v3627_v48 = vpop.f32.mrf.mxu1 }
 0x4c1   : > { %v1750_v51 = vsel %vm1160_vm3, %v1744_v47, -inf }
 0x4c2   : > { %1754 = vmax.xlane.f32.xlu0 %v1753_v50  ;;  %1751 = vmax.xlane.f32.xlu1 %v1750_v51  ;;  %v3386_v50 = vld [vmem:[%s4504_s23 + $0x2] ss:$0 sm:$0xff] }
 0x4c6   : > { %1757 = vmax.xlane.f32.xlu1 %v1756_v52  ;;  %v3806_v52 = vld [vmem:[%s4086_s21 + $0x38] sm:$0xff]  }
 0x547   : > { %v1749_v54 = vpop.xlane.xlu0 %1748 }
 0x548   : > { %v1759_v58 = vsub.f32 %v1743_v40, %v1749_v54 }
 0x54a   : > { %v1763_v59 = vmul.f32 1.442695, %v1759_v58 }
 0x54b   : > { %v1755_v62 = vpop.xlane.xlu0 %1754  ;;  %v1752_v63 = vpop.xlane.xlu1 %1751 }
 0x54c   : > { %3832 = vpow2.f32 %v1763_v59  ;;  %v1761_v0 = vsub.f32 %v1745_v43, %v1755_v62  ;;  %v1760_v1 = vsub.f32 %v1744_v47, %v1752_v63  ;;  %v3804_v43 = vld [vmem:[%s4066_s30 + $0x30] sm:$0xff]  }
 0x54d   : > { %v3807_v63 = vld [vmem:[%s4086_s21 + $0x30] sm:$0xff]   ;;  %s4506_s21 = sld [smem:[#allocation16_spill]] }
 0x54e   : > { %v1767_v2 = vmul.f32 1.442695, %v1761_v0  ;;  %v1765_v3 = vmul.f32 1.442695, %v1760_v1 }
 0x54f   : > { %v1758_v4 = vpop.xlane.xlu1 %1757 }
 0x550   : > { %3834 = vpow2.f32 %v1767_v2  ;;  %v1762_v5 = vsub.f32 %v1746_v49, %v1758_v4 }
 0x551   : > { %3836 = vpow2.f32 %v1765_v3 }
 0x552   : > { %v1769_v6 = vmul.f32 1.442695, %v1762_v5 }
 0x554   : > { %3838 = vpow2.f32 %v1769_v6 }
 0x559   : > { %v3833_v7 = vpop.eup %3832 }
 0x55a   : > { %v1771_v8 = vsel %vm1160_vm3, %v3833_v7, 0.0 }
 0x55b   : > { %1772 = vadd.xlane.f32.xlu0 %v1771_v8 }
 0x55d   : > { %v3835_v9 = vpop.eup %3834 }
 0x55e   : > { %v3837_v10 = vpop.eup %3836  ;;  %v1777_v11 = vsel %vm1160_vm3, %v3835_v9, 0.0 }
 0x55f   : > { %1778 = vadd.xlane.f32.xlu0 %v1777_v11  ;;  %v1774_v12 = vsel %vm1160_vm3, %v3837_v10, 0.0 }
 0x560   : > { %1775 = vadd.xlane.f32.xlu1 %v1774_v12 }
 0x561   : > { %v3839_v14 = vpop.eup %3838 }
 0x562   : > { %v1780_v17 = vsel %vm1160_vm3, %v3839_v14, 0.0 }
 0x564   : > { %1781 = vadd.xlane.f32.xlu1 %v1780_v17 }
 0x5e4   : > { %v1773_v19 = vpop.xlane.xlu0 %1772 }
 0x5e5   : > { %3840 = vrcp.f32 %v1773_v19 }
 0x5e8   : > { %v1779_v20 = vpop.xlane.xlu0 %1778 }
 0x5e9   : > { %v1776_v21 = vpop.xlane.xlu1 %1775 }
 0x5ea   : > { %3842 = vrcp.f32 %v1776_v21 }
 0x5eb   : > { %3844 = vrcp.f32 %v1779_v20 }
 0x5ed   : > { %v1782_v22 = vpop.xlane.xlu1 %1781 }
 0x5ee   : > { %3846 = vrcp.f32 %v1782_v22 }
 0x5f2   : > { %v3841_v23 = vpop.eup %3840 }
 0x5f3   : > { %v1787_v25 = vmul.f32 %v3841_v23, %v3833_v7  ;;  %v3399_v23 = vld [vmem:[%s4091_s18 + $0x2] ss:$0 sm:$0xff]  ;;  %s4507_s18 = scalar_lea.vmem %s4506_s21, %s4051_s1 }
 0x5f7   : > { %v3843_v24 = vpop.eup %3842 }
 0x5f8   : > { %v1788_v26 = vmul.f32 %v3843_v24, %v3837_v10  ;;  %v3845_v27 = vpop.eup %3844 }
 0x5f9   : > { %v1789_v30 = vmul.f32 %v3845_v27, %v3835_v9 }
 0x5fa   : > { %v1791_v28 = vpack.c.bf16 %v1788_v26, %v1787_v25 }
 0x5fb   : > { %v3847_v29 = vpop.eup %3846 }
 0x5fc   : > { %3637 = vmatmul.mubr.msk.bf16.vlgmr.msra.gmra.mxu1 %vm1160_vm3, %v1791_v28  ;;  %v1790_v31 = vmul.f32 %v3847_v29, %v3839_v14 }
 0x5fd   : > { %3647 = vmatpush3.bf16.msra.mxu1 %v3800_v35 }
 0x5fe   : > { %v1792_v32 = vpack.c.bf16 %v1790_v31, %v1789_v30  ;;  %3658 = vmatprep.subr.bf16.mxu1 %v3802_v53 }
 0x600   : > { %3643 = vmatmul.mubr.msk.bf16.vlgmr.msra.gmra.mxu0 %vm1160_vm3, %v1792_v32 }
 0x601   : > { %3654 = vmatprep.mubr.msk.bf16.mxu0 %vm1160_vm3, %v1393_v61  ;;  %3653 = vmatpush3.bf16.msra.mxu0 %v3797_v18 }
 0x602   : > { %3668 = vmatprep.subr.bf16.mxu0 %v3798_v33 }
 0x608   : > { %3655 = vmatmul.mubr.msk.bf16.vlgmr.msra.gmra.mxu0 %vm1160_vm3, %v1394_v57 }
 0x609   : > { %3669 = vmatpush3.bf16.msra.mxu0 %v3798_v33  ;;  %3674 = vmatprep.mubr.msk.bf16.mxu0 %vm938_vm1, %v4149_v13 }
 0x60a   : > { %3670 = vmatprep.subr.bf16.mxu0 %v3799_v34 }
 0x60d   : > { %3671 = vmatpush3.bf16.msra.mxu0 %v3799_v34 }
 0x60e   : > { %3672 = vmatprep.subr.bf16.mxu0 %v3801_v36 }
 0x611   : > { %3673 = vmatpush3.bf16.msra.mxu0 %v3801_v36 }
 0x612   : > { %3688 = vmatprep.subr.bf16.mxu0 %v3927_v16 }
 0x614   : > { %3675 = vmatmul.mubr.msk.bf16.vlgmr.msra.gmra.mxu0 %vm938_vm1, %v4153_v15 }
 0x615   : > { %3690 = vmatprep.mubr.msk.bf16.mxu0 %vm3928_vm2, %v3927_v16 }
 0x6bc   : > { %v1830_v55 = vpop.f32.mrf.mxu1 }
 0x6be   : > { %v3638_v56 = vpop.f32.mrf.mxu1 }
 0x6c0   : > { %v1833_v57 = vpop.f32.mrf.mxu1  ;;  %v1874_v60 = vpop.f32.mrf.mxu0 }
 0x6c1   : > { %v1881_v61 = vpack.c.bf16 %v1833_v57, %v1830_v55 }
 0x6c2   : > { %v3639_v37 = vpop.f32.mrf.mxu1  ;;  %v3644_v38 = vpop.f32.mrf.mxu0 }
 0x6c3   : > { %3648 = vmatprep.mubr.msk.bf16.mxu1 %vm1160_vm3, %v1881_v61 }
 0x6c4   : > { %v1877_v39 = vpop.f32.mrf.mxu0 }
 0x6c5   : > { %v1882_v40 = vpack.c.bf16 %v1877_v39, %v1874_v60 }
 0x6c6   : > { %v3645_v42 = vpop.f32.mrf.mxu0 }
 0x6c7   : > { %3649 = vmatmul.mubr.msk.bf16.vlgmr.msra.gmra.mxu1 %vm1160_vm3, %v1882_v40 }
 0x6c8   : > { %3659 = vmatpush3.bf16.msra.mxu1 %v3802_v53  ;;  %3664 = vmatprep.mubr.msk.bf16.mxu1 %vm938_vm1, %v4149_v13  ;;  %v4291_v45 = vpop.f32.mrf.mxu0 }
 0x6c9   : > { %3660 = vmatprep.subr.bf16.mxu1 %v3803_v41 }
 0x6ca   : > { %v4293_v46 = vpop.f32.mrf.mxu0 }
 0x6cc   : > { %3661 = vmatpush3.bf16.msra.mxu1 %v3803_v41  ;;  %v4295_v47 = vpop.f32.mrf.mxu0 }
 0x6cd   : > { %3662 = vmatprep.subr.bf16.mxu1 %v3804_v43 }
 0x6ce   : > { %v4297_v48 = vpop.f32.mrf.mxu0 }
 0x6d0   : > { %3663 = vmatpush3.bf16.msra.mxu1 %v3804_v43 }
 0x6d1   : > { %3678 = vmatprep.subr.bf16.mxu1 %v3805_v44 }
 0x6d3   : > { %3665 = vmatmul.mubr.msk.bf16.vlgmr.msra.gmra.mxu1 %vm938_vm1, %v4153_v15 }
 0x6d4   : > { %3679 = vmatpush3.bf16.msra.mxu1 %v3805_v44  ;;  %3684 = vmatprep.mubr.msk.bf16.mxu1 %vm938_vm1, %v4149_v13  ;;  %v3676_v49 = vpop.f32.mrf.mxu0 }
 0x6d5   : > { %v2166_v54 = vadd.f32 %v3676_v49, %v3386_v50  ;;  %3680 = vmatprep.subr.bf16.mxu1 %v3806_v52 }
 0x6d6   : > { %v2157_v51 = vpop.f32.mrf.mxu0 }
 0x6d7   : > { %v2158_v59 = vadd.f32 %v3386_v50, %v2157_v51 }
 0x6d8   : > { %v3677_v58 = vpop.f32.mrf.mxu0  ;;  %3681 = vmatpush3.bf16.msra.mxu1 %v3806_v52 }
 0x6d9   : > { %v2169_v62 = vadd.f32 %v3677_v58, %v3386_v50  ;;  %3682 = vmatprep.subr.bf16.mxu1 %v3807_v63 }
 0x6da   : > { %v2160_v13 = vpop.f32.mrf.mxu0 }
 0x6db   : > { %v2257_v0 = vpack.c.bf16 %v2169_v62, %v2166_v54  ;;  %v2161_v1 = vadd.f32 %v3386_v50, %v2160_v13 }
 0x6dc   : > { %3683 = vmatpush3.bf16.msra.mxu1 %v3807_v63 }
 0x6dd   : > { %v2256_v2 = vpack.c.bf16 %v2161_v1, %v2158_v59  ;;  %3694 = vmatprep.subr.bf16.mxu1 %v3927_v16  ;;  %v2311_v3 = vsel %vm1160_vm3, %v2257_v0, 0 }
 0x6df   : > { %v2264_v4 = vsel %vm1160_vm3, %v2256_v2, 0  ;;  %3685 = vmatmul.mubr.msk.bf16.vlgmr.msra.gmra.mxu1 %vm938_vm1, %v4153_v15  ;;  %v3373_v15 = vld [vmem:[%s4505_s26 + $0x2] ss:$0 sm:$0xff] }
 0x6e0   : > { %3689 = vmatpush3.bf16.xpose.msra.mxu0 %v2264_v4  ;;  %3695 = vmatpush3.bf16.xpose.msra.mxu1 %v2311_v3 }
 0x6e1   : > { %3696 = vmatprep.mubr.msk.bf16.mxu1 %vm3928_vm2, %v3927_v16  ;;  %3700 = vmatprep.subr.bf16.mxu0 %v3927_v16 }
 0x6e2   : > { %3706 = vmatprep.subr.bf16.mxu1 %v3927_v16 }
 0x787   : > { %v4311_v5 = vpop.f32.mrf.mxu1 }
 0x789   : > { %v4313_v6 = vpop.f32.mrf.mxu1 }
 0x78b   : > { %v4315_v7 = vpop.f32.mrf.mxu1 }
 0x78d   : > { %v4317_v8 = vpop.f32.mrf.mxu1 }
 0x793   : > { %v3666_v9 = vpop.f32.mrf.mxu1 }
 0x794   : > { %v2084_v12 = vadd.f32 %v3666_v9, %v3373_v15 }
 0x795   : > { %v2075_v10 = vpop.f32.mrf.mxu1 }
 0x796   : > { %v2076_v18 = vadd.f32 %v3373_v15, %v2075_v10 }
 0x797   : > { %v3667_v11 = vpop.f32.mrf.mxu1 }
 0x798   : > { %v2087_v14 = vadd.f32 %v3667_v11, %v3373_v15 }
 0x799   : > { %v2078_v17 = vpop.f32.mrf.mxu1 }
 0x79a   : > { %v2255_v19 = vpack.c.bf16 %v2087_v14, %v2084_v12  ;;  %v2079_v20 = vadd.f32 %v3373_v15, %v2078_v17 }
 0x79c   : > { %v2254_v21 = vpack.c.bf16 %v2079_v20, %v2076_v18  ;;  %3697 = vmatmul.mubr.msk.bf16.vlgmr.msra.gmra.mxu1 %vm1160_vm3, %v2255_v19 }
 0x79d   : > { %3708 = vmatprep.mubr.msk.bf16.mxu1 %vm3928_vm2, %v3927_v16 }
 0x79e   : > { %3691 = vmatmul.mubr.msk.bf16.vlgmr.msra.gmra.mxu0 %vm1160_vm3, %v2254_v21 }
 0x79f   : > { %3702 = vmatprep.mubr.msk.bf16.mxu0 %vm3928_vm2, %v3927_v16  ;;  %v3686_v22 = vpop.f32.mrf.mxu1 }
 0x7a0   : > { %v2248_v25 = vadd.f32 %v3686_v22, %v3399_v23 }
 0x7a1   : > { %v2239_v24 = vpop.f32.mrf.mxu1 }
 0x7a2   : > { %v2240_v27 = vadd.f32 %v3399_v23, %v2239_v24 }
 0x7a3   : > { %v3687_v26 = vpop.f32.mrf.mxu1 }
 0x7a4   : > { %v2251_v28 = vadd.f32 %v3687_v26, %v3399_v23 }
 0x7a5   : > { %v2242_v29 = vpop.f32.mrf.mxu1 }
 0x7a6   : > { %v2259_v30 = vpack.c.bf16 %v2251_v28, %v2248_v25  ;;  %v2243_v31 = vadd.f32 %v3399_v23, %v2242_v29 }
 0x7a8   : > { %v2258_v32 = vpack.c.bf16 %v2243_v31, %v2240_v27  ;;  %3707 = vmatpush3.bf16.msra.mxu1 %v2259_v30  ;;  %v3808_v27 = vld [vmem:[%s4106_s22 + $0x10] sm:$0xff]  }
 0x7aa   : > { %3701 = vmatpush3.bf16.msra.mxu0 %v2258_v32 }
 0x7ab   : > { %3712 = vmatprep.subr.bf16.mxu0 %v3808_v27 }
 0x85c   : > { %v2347_v33 = vpop.f32.mrf.mxu1 }
 0x85d   : > { %v2356_v16 = vmul.f32 0.25, %v2347_v33 }
 0x85e   : > { %v2300_v34 = vpop.f32.mrf.mxu0  ;;  %v3698_v35 = vpop.f32.mrf.mxu1 }
 0x85f   : > { %v2354_v36 = vmul.f32 0.25, %v2300_v34  ;;  %v2364_v39 = vsel %vm1160_vm3, %v2356_v16, -inf }
 0x860   : > { %v3692_v53 = vpop.f32.mrf.mxu0  ;;  %v2350_v55 = vpop.f32.mrf.mxu1 }
 0x861   : > { %v2358_v56 = vsel %vm1160_vm3, %v2354_v36, -inf  ;;  %v2357_v38 = vmul.f32 0.25, %v2350_v55  ;;  %v2002_v55 = vadd.f32 %v4291_v45, %v4311_v5 }
 0x862   : > { %v3699_v57 = vpop.f32.mrf.mxu1  ;;  %2359 = vmax.xlane.f32.xlu0 %v2358_v56  ;;  %v2303_v60 = vpop.f32.mrf.mxu0  ;;  %v1994_v56 = vadd.f32 %v4293_v46, %v4313_v6  ;;  %v3880_v6 = vld [vmem:[#allocation2] sm:$0xff] }
 0x863   : > { %v2355_v61 = vmul.f32 0.25, %v2303_v60  ;;  %v2367_v41 = vsel %vm1160_vm3, %v2357_v38, -inf  ;;  %v3414_v60 = vld [vmem:[%s4507_s18] ss:$0 sm:$0xff] }
 0x864   : > { %v3693_v37 = vpop.f32.mrf.mxu0 }
 0x865   : > { %v2361_v40 = vsel %vm1160_vm3, %v2355_v61, -inf  ;;  %v2005_v37 = vadd.f32 %v4295_v47, %v4315_v7  ;;  %v3882_v47 = vld [vmem:[#allocation2 + $0x8] sm:$0xff] }
 0x866   : > { %2365 = vmax.xlane.f32.xlu0 %v2364_v39  ;;  %2362 = vmax.xlane.f32.xlu1 %v2361_v40  ;;  %v1997_v40 = vadd.f32 %v4297_v48, %v4317_v8  ;;  %v3883_v8 = vld [vmem:[#allocation2 + $0x18] sm:$0xff] }
 0x86a   : > { %2368 = vmax.xlane.f32.xlu1 %v2367_v41 }
 0x8eb   : > { %v2360_v42 = vpop.xlane.xlu0 %2359 }
 0x8ec   : > { %v2370_v43 = vsub.f32 %v2354_v36, %v2360_v42 }
 0x8ee   : > { %v2374_v44 = vmul.f32 1.442695, %v2370_v43 }
 0x8ef   : > { %v2366_v49 = vpop.xlane.xlu0 %2365  ;;  %v2363_v50 = vpop.xlane.xlu1 %2362 }
 0x8f0   : > { %3848 = vpow2.f32 %v2374_v44  ;;  %v2372_v51 = vsub.f32 %v2356_v16, %v2366_v49  ;;  %v2371_v52 = vsub.f32 %v2355_v61, %v2363_v50 }
 0x8f2   : > { %v2378_v54 = vmul.f32 1.442695, %v2372_v51  ;;  %v2376_v58 = vmul.f32 1.442695, %v2371_v52  ;;  %v3881_v51 = vld [vmem:[#allocation2 + $0x10] sm:$0xff] }
 0x8f3   : > { %v2369_v59 = vpop.xlane.xlu1 %2368 }
 0x8f4   : > { %3850 = vpow2.f32 %v2378_v54  ;;  %v2373_v62 = vsub.f32 %v2357_v38, %v2369_v59 }
 0x8f5   : > { %3852 = vpow2.f32 %v2376_v58 }
 0x8f6   : > { %v2380_v13 = vmul.f32 1.442695, %v2373_v62 }
 0x8f8   : > { %3854 = vpow2.f32 %v2380_v13 }
 0x8fd   : > { %v3849_v63 = vpop.eup %3848 }
 0x8fe   : > { %v2382_v0 = vsel %vm1160_vm3, %v3849_v63, 0.0 }
 0x8ff   : > { %2383 = vadd.xlane.f32.xlu0 %v2382_v0 }
 0x901   : > { %v3851_v1 = vpop.eup %3850 }
 0x902   : > { %v3853_v2 = vpop.eup %3852  ;;  %v2388_v3 = vsel %vm1160_vm3, %v3851_v1, 0.0 }
 0x903   : > { %2389 = vadd.xlane.f32.xlu0 %v2388_v3  ;;  %v2385_v4 = vsel %vm1160_vm3, %v3853_v2, 0.0 }
 0x904   : > { %2386 = vadd.xlane.f32.xlu1 %v2385_v4 }
 0x905   : > { %v3855_v9 = vpop.eup %3854 }
 0x906   : > { %v2391_v15 = vsel %vm1160_vm3, %v3855_v9, 0.0 }
 0x908   : > { %2392 = vadd.xlane.f32.xlu1 %v2391_v15 }
 0x988   : > { %v2384_v10 = vpop.xlane.xlu0 %2383 }
 0x989   : > { %3856 = vrcp.f32 %v2384_v10 }
 0x98c   : > { %v2390_v11 = vpop.xlane.xlu0 %2389 }
 0x98d   : > { %v2387_v12 = vpop.xlane.xlu1 %2386 }
 0x98e   : > { %3858 = vrcp.f32 %v2387_v12 }
 0x98f   : > { %3860 = vrcp.f32 %v2390_v11 }
 0x991   : > { %v2393_v14 = vpop.xlane.xlu1 %2392 }
 0x992   : > { %3862 = vrcp.f32 %v2393_v14 }
 0x996   : > { %v3857_v17 = vpop.eup %3856 }
 0x997   : > { %v2398_v19 = vmul.f32 %v3857_v17, %v3849_v63 }
 0x99b   : > { %v3859_v18 = vpop.eup %3858 }
 0x99c   : > { %v2399_v20 = vmul.f32 %v3859_v18, %v3853_v2  ;;  %v3861_v21 = vpop.eup %3860 }
 0x99d   : > { %v2400_v24 = vmul.f32 %v3861_v21, %v3851_v1 }
 0x99e   : > { %v2402_v22 = vpack.c.bf16 %v2399_v20, %v2398_v19 }
 0x99f   : > { %v3863_v23 = vpop.eup %3862 }
 0x9a0   : > { %3703 = vmatmul.mubr.msk.bf16.vlgmr.msra.gmra.mxu0 %vm1160_vm3, %v2402_v22  ;;  %v2401_v25 = vmul.f32 %v3863_v23, %v3855_v9  ;;  %v3809_v23 = vld [vmem:[%s4111_s9 + $0x10] sm:$0xff]  }
 0x9a1   : > { %3713 = vmatpush3.bf16.msra.mxu0 %v3808_v27  ;;  %3718 = vmatprep.subr.bf16.mxu1 %v3809_v23 }
 0x9a2   : > { %v2403_v26 = vpack.c.bf16 %v2401_v25, %v2400_v24  ;;  %v3810_v24 = vld [vmem:[%s4111_s9 + $0x8] sm:$0xff]   ;;  %v3811_v25 = vld [vmem:[%s4111_s9] sm:$0xff]  }
 0x9a4   : > { %3709 = vmatmul.mubr.msk.bf16.vlgmr.msra.gmra.mxu1 %vm1160_vm3, %v2403_v26  ;;  %v3812_v26 = vld [vmem:[%s4116_s20 + $0x18] sm:$0xff]  }
 0x9a5   : > { %3719 = vmatpush3.bf16.msra.mxu1 %v3809_v23  ;;  %3728 = vmatprep.subr.bf16.mxu0 %v3812_v26 }
 0x9a6   : > { %3720 = vmatprep.subr.bf16.mxu1 %v3810_v24 }
 0x9a9   : > { %3721 = vmatpush3.bf16.msra.mxu1 %v3810_v24 }
 0x9aa   : > { %3722 = vmatprep.subr.bf16.mxu1 %v3811_v25 }
 0x9ad   : > { %3723 = vmatpush3.bf16.msra.mxu1 %v3811_v25 }
 0xa60   : > { %v2441_v28 = vpop.f32.mrf.mxu0 }
 0xa62   : > { %v3704_v29 = vpop.f32.mrf.mxu0 }
 0xa64   : > { %v2444_v30 = vpop.f32.mrf.mxu0  ;;  %v2485_v31 = vpop.f32.mrf.mxu1 }
 0xa65   : > { %v2492_v32 = vpack.c.bf16 %v2444_v30, %v2441_v28 }
 0xa66   : > { %v3705_v33 = vpop.f32.mrf.mxu0  ;;  %v3710_v34 = vpop.f32.mrf.mxu1 }
 0xa67   : > { %3714 = vmatprep.mubr.msk.bf16.mxu0 %vm1160_vm3, %v2492_v32 }
 0xa68   : > { %v2488_v35 = vpop.f32.mrf.mxu1 }
 0xa69   : > { %v2493_v36 = vpack.c.bf16 %v2488_v35, %v2485_v31 }
 0xa6a   : > { %v3711_v53 = vpop.f32.mrf.mxu1 }
 0xa6b   : > { %3715 = vmatmul.mubr.msk.bf16.vlgmr.msra.gmra.mxu0 %vm1160_vm3, %v2493_v36 }
 0xa6c   : > { %3729 = vmatpush3.bf16.msra.mxu0 %v3812_v26 }
 0xb2b   : > { %v3716_v16 = vpop.f32.mrf.mxu0 }
 0xb2c   : > { %v2560_v57 = vadd.f32 %v3716_v16, %v2002_v55 }
 0xb2d   : > { %v2543_v61 = vpop.f32.mrf.mxu0 }
 0xb2e   : > { %v2558_v38 = vadd.f32 %v2543_v61, %v1994_v56  ;;  %v2571_v45 = vadd.f32 %v3414_v60, %v2560_v57  ;;  %v3415_v57 = vld [vmem:[%s4509_s19] ss:$0 sm:$0xff] }
 0xb2f   : > { %v3717_v39 = vpop.f32.mrf.mxu0 }
 0xb30   : > { %v2569_v5 = vadd.f32 %v3414_v60, %v2558_v38  ;;  %v2561_v41 = vadd.f32 %v3717_v39, %v2005_v37  ;;  %v2575_v52 = vadd.f32 %v3881_v51, %v2571_v45 }
 0xb31   : > { %v2546_v42 = vpop.f32.mrf.mxu0 }
 0xb32   : > { %v2559_v46 = vadd.f32 %v2546_v42, %v1997_v40  ;;  %v2573_v43 = vadd.f32 %v3880_v6, %v2569_v5  ;;  %v2572_v44 = vadd.f32 %v3414_v60, %v2561_v41  ;;  %v2585_v54 = vsel %vm938_vm1, %v2575_v52, 0.0  ;;  %v3416_v40 = vld [vmem:[%s4510_s29] ss:$0 sm:$0xff] }
 0xb34   : > { %v2570_v49 = vadd.f32 %v3414_v60, %v2559_v46  ;;  %v2579_v50 = vsel %vm938_vm1, %v2573_v43, 0.0  ;;  %v2576_v58 = vadd.f32 %v3883_v8, %v2572_v44  ;;  %v3417_v8 = vld [vmem:[%s4511_s5] ss:$0 sm:$0xff] }
 0xb35   : > { %2580 = vadd.xlane.f32.xlu0 %v2579_v50 }
 0xb36   : > { %v2574_v7 = vadd.f32 %v3882_v47, %v2570_v49  ;;  %v2588_v59 = vsel %vm938_vm1, %v2576_v58, 0.0  ;;  %v3814_v47 = vld [vmem:[%s4116_s20 + $0x8] sm:$0xff]  }
 0xb38   : > { %v2582_v48 = vsel %vm938_vm1, %v2574_v7, 0.0 }
 0xb39   : > { %2586 = vadd.xlane.f32.xlu0 %v2585_v54  ;;  %2583 = vadd.xlane.f32.xlu1 %v2582_v48 }
 0xb3d   : > { %2589 = vadd.xlane.f32.xlu1 %v2588_v59 }
 0xbbe   : > { %v2581_v62 = vpop.xlane.xlu0 %2580 }
 0xbbf   : > { %v2592_v13 = vmul.f32 0.020833334, %v2581_v62 }
 0xbc1   : > { %v2596_v63 = vsub.f32 %v2573_v43, %v2592_v13 }
 0xbc2   : > { %v2587_v0 = vpop.xlane.xlu0 %2586  ;;  %v2584_v1 = vpop.xlane.xlu1 %2583 }
 0xbc3   : > { %v2594_v2 = vmul.f32 0.020833334, %v2587_v0  ;;  %v2593_v3 = vmul.f32 0.020833334, %v2584_v1  ;;  %v2600_v4 = vmul.f32 %v2596_v63, %v2596_v63 }
 0xbc5   : > { %v2598_v9 = vsub.f32 %v2575_v52, %v2594_v2  ;;  %v2597_v15 = vsub.f32 %v2574_v7, %v2593_v3  ;;  %v2604_v10 = vsel %vm938_vm1, %v2600_v4, 0.0  ;;  %v3813_v52 = vld [vmem:[%s4116_s20 + $0x10] sm:$0xff]   ;;  %v3815_v7 = vld [vmem:[%s4116_s20] sm:$0xff]  }
 0xbc6   : > { %2605 = vadd.xlane.f32.xlu0 %v2604_v10  ;;  %v2590_v11 = vpop.xlane.xlu1 %2589  ;;  %3730 = vmatprep.subr.bf16.mxu0 %v3813_v52 }
 0xbc7   : > { %v2595_v12 = vmul.f32 0.020833334, %v2590_v11  ;;  %v2602_v14 = vmul.f32 %v2598_v9, %v2598_v9  ;;  %v2601_v17 = vmul.f32 %v2597_v15, %v2597_v15  ;;  %3731 = vmatpush3.bf16.msra.mxu0 %v3813_v52  ;;  %v3423_v11 = vld [vmem:[%s874_s8] ss:$0 sm:$0xff] }
 0xbc8   : > { %3732 = vmatprep.subr.bf16.mxu0 %v3814_v47 }
 0xbc9   : > { %v2599_v18 = vsub.f32 %v2576_v58, %v2595_v12  ;;  %v2610_v19 = vsel %vm938_vm1, %v2602_v14, 0.0  ;;  %v2607_v20 = vsel %vm938_vm1, %v2601_v17, 0.0 }
 0xbca   : > { %2611 = vadd.xlane.f32.xlu0 %v2610_v19  ;;  %2608 = vadd.xlane.f32.xlu1 %v2607_v20 }
 0xbcb   : > { %v2603_v21 = vmul.f32 %v2599_v18, %v2599_v18  ;;  %3733 = vmatpush3.bf16.msra.mxu0 %v3814_v47 }
 0xbcc   : > { %3734 = vmatprep.subr.bf16.mxu0 %v3815_v7 }
 0xbcd   : > { %v2613_v22 = vsel %vm938_vm1, %v2603_v21, 0.0 }
 0xbce   : > { %2614 = vadd.xlane.f32.xlu1 %v2613_v22 }
 0xbcf   : > { %3735 = vmatpush3.bf16.msra.mxu0 %v3815_v7 }
 0xc4f   : > { %v2606_v27 = vpop.xlane.xlu0 %2605 }
 0xc50   : > { %v2616_v28 = vmul.f32 0.020833334, %v2606_v27 }
 0xc52   : > { %v2620_v29 = vadd.f32 1e-05, %v2616_v28 }
 0xc53   : > { %v2612_v30 = vpop.xlane.xlu0 %2611  ;;  %v2609_v31 = vpop.xlane.xlu1 %2608 }
 0xc54   : > { %3864 = vrsqrt.f32 %v2620_v29  ;;  %v2618_v32 = vmul.f32 0.020833334, %v2612_v30  ;;  %v2617_v33 = vmul.f32 0.020833334, %v2609_v31 }
 0xc56   : > { %v2622_v34 = vadd.f32 1e-05, %v2618_v32  ;;  %v2621_v35 = vadd.f32 1e-05, %v2617_v33 }
 0xc57   : > { %v2615_v36 = vpop.xlane.xlu1 %2614 }
 0xc58   : > { %3866 = vrsqrt.f32 %v2622_v34  ;;  %v2619_v53 = vmul.f32 0.020833334, %v2615_v36 }
 0xc59   : > { %3868 = vrsqrt.f32 %v2621_v35 }
 0xc5a   : > { %v2623_v55 = vadd.f32 1e-05, %v2619_v53 }
 0xc5c   : > { %3870 = vrsqrt.f32 %v2623_v55 }
 0xc61   : > { %v3865_v16 = vpop.eup %3864 }
 0xc62   : > { %v2628_v56 = vmul.f32 %v3865_v16, %v2596_v63 }
 0xc64   : > { %v2638_v39 = vmul.f32 %v3415_v57, %v2628_v56 }
 0xc65   : > { %v3867_v60 = vpop.eup %3866 }
 0xc66   : > { %v3869_v61 = vpop.eup %3868  ;;  %v2630_v37 = vmul.f32 %v3867_v60, %v2598_v9  ;;  %v2648_v46 = vadd.f32 %v3416_v40, %v2638_v39 }
 0xc67   : > { %v2629_v38 = vmul.f32 %v3869_v61, %v2597_v15 }
 0xc68   : > { %v2640_v42 = vmul.f32 %v3415_v57, %v2630_v37 }
 0xc69   : > { %v3871_v45 = vpop.eup %3870  ;;  %v2639_v5 = vmul.f32 %v3415_v57, %v2629_v38 }
 0xc6a   : > { %v2631_v41 = vmul.f32 %v3871_v45, %v2599_v18  ;;  %v2650_v49 = vadd.f32 %v3416_v40, %v2640_v42 }
 0xc6b   : > { %v2649_v6 = vadd.f32 %v3416_v40, %v2639_v5 }
 0xc6c   : > { %v2641_v43 = vmul.f32 %v3415_v57, %v2631_v41 }
 0xc6d   : > { %v2652_v44 = vpack.c.bf16 %v2649_v6, %v2648_v46 }
 0xc6e   : > { %v2651_v50 = vadd.f32 %v3416_v40, %v2641_v43 }
 0xc6f   : > { %3724 = vmatprep.mubr.msk.bf16.mxu1 %vm938_vm1, %v2652_v44 }
 0xc70   : > { %v2653_v51 = vpack.c.bf16 %v2651_v50, %v2650_v49 }
 0xc72   : > { %3725 = vmatmul.mubr.msk.bf16.vlgmr.msra.gmra.mxu1 %vm938_vm1, %v2653_v51 }
 0xd32   : > { %v3726_v54 = vpop.f32.mrf.mxu1 }
 0xd33   : > { %v2734_v13 = vadd.f32 %v3726_v54, %v3417_v8 }
 0xd34   : > { %v2725_v48 = vpop.f32.mrf.mxu1 }
 0xd35   : > { %v2726_v59 = vadd.f32 %v3417_v8, %v2725_v48  ;;  %v2742_v4 = vmax.f32 %v2734_v13, 0.0  ;;  %v3430_v48 = vld [vmem:[%s877_s4] ss:$0 sm:$0xff] }
 0xd36   : > { %v3727_v58 = vpop.f32.mrf.mxu1 }
 0xd37   : > { %v2737_v62 = vadd.f32 %v3727_v58, %v3417_v8  ;;  %v2740_v2 = vmax.f32 %v2726_v59, 0.0  ;;  %v3431_v58 = vld [vmem:[%s880_s6] ss:$0 sm:$0xff]  ;;  %s4512_s6 = sld [smem:[#allocation3_spill]] }
 0xd38   : > { %v2728_v63 = vpop.f32.mrf.mxu1 }
 0xd39   : > { %v2729_v0 = vadd.f32 %v3417_v8, %v2728_v63  ;;  %v2743_v1 = vmax.f32 %v2737_v62, 0.0 }
 0xd3b   : > { %v2741_v3 = vmax.f32 %v2729_v0, 0.0  ;;  %v2745_v15 = vpack.c.bf16 %v2743_v1, %v2742_v4 }
 0xd3d   : > { %v2744_v9 = vpack.c.bf16 %v2741_v3, %v2740_v2  ;;  %p3432_p6 = scmp.ne.s32.totalorder %s4512_s6, 1 }
 0xd3e   : > { %s4513_s30 = sld [smem:[#allocation18_spill]] (!%p3432_p6) }
 0xd3f   : > { %3736 = vmatprep.mubr.msk.bf16.mxu0 %vm2785_vm4, %v2744_v9  ;;  %s4515_s3 = sld [smem:[#allocation19_spill]] (!%p3432_p6) }
 0xd40   : > { %3737 = vmatmul.mubr.msk.bf16.vlgmr.msra.gmra.mxu0 %vm2785_vm4, %v2745_v15  ;;  %s4516_s2 = sld [smem:[#allocation20_spill]] (!%p3432_p6) }
 0xd44   : > { %s4514_s21 = smov (!%p3432_p6), %s4513_s30 }
 0xe00   : > { %v3738_v10 = vpop.f32.mrf.mxu0 }
 0xe01   : > { %v2835_v14 = vadd.f32 %v3738_v10, %v3423_v11 }
 0xe02   : > { %v2826_v12 = vpop.f32.mrf.mxu0 }
 0xe03   : > { %v2827_v17 = vadd.f32 %v3423_v11, %v2826_v12  ;;  %v2843_v24 = vadd.f32 %v2835_v14, %v2650_v49 }
 0xe04   : > { %v3739_v18 = vpop.f32.mrf.mxu0 }
 0xe05   : > { %v2841_v19 = vadd.f32 %v2827_v17, %v2648_v46  ;;  %v2838_v21 = vadd.f32 %v3739_v18, %v3423_v11  ;;  %v2853_v27 = vsel %vm938_vm1, %v2843_v24, 0.0 }
 0xe06   : > { %v2829_v20 = vpop.f32.mrf.mxu0 }
 0xe07   : > { %v2830_v22 = vadd.f32 %v3423_v11, %v2829_v20  ;;  %v2847_v23 = vsel %vm938_vm1, %v2841_v19, 0.0  ;;  %v2844_v28 = vadd.f32 %v2838_v21, %v2651_v50 }
 0xe08   : > { %2848 = vadd.xlane.f32.xlu0 %v2847_v23 }
 0xe09   : > { %v2842_v25 = vadd.f32 %v2830_v22, %v2649_v6  ;;  %v2856_v29 = vsel %vm938_vm1, %v2844_v28, 0.0 }
 0xe0b   : > { %v2850_v26 = vsel %vm938_vm1, %v2842_v25, 0.0 }
 0xe0c   : > { %2851 = vadd.xlane.f32.xlu1 %v2850_v26  ;;  %2854 = vadd.xlane.f32.xlu0 %v2853_v27 }
 0xe10   : > { %2857 = vadd.xlane.f32.xlu1 %v2856_v29 }
 0xe91   : > { %v2849_v30 = vpop.xlane.xlu0 %2848 }
 0xe92   : > { %v2859_v31 = vmul.f32 0.020833334, %v2849_v30 }
 0xe94   : > { %v2863_v32 = vsub.f32 %v2841_v19, %v2859_v31 }
 0xe95   : > { %v2852_v33 = vpop.xlane.xlu1 %2851  ;;  %v2855_v34 = vpop.xlane.xlu0 %2854 }
 0xe96   : > { %v2860_v35 = vmul.f32 0.020833334, %v2852_v33  ;;  %v2861_v36 = vmul.f32 0.020833334, %v2855_v34  ;;  %v2867_v53 = vmul.f32 %v2863_v32, %v2863_v32 }
 0xe98   : > { %v2864_v55 = vsub.f32 %v2842_v25, %v2860_v35  ;;  %v2865_v16 = vsub.f32 %v2843_v24, %v2861_v36  ;;  %v2871_v56 = vsel %vm938_vm1, %v2867_v53, 0.0 }
 0xe99   : > { %v2858_v57 = vpop.xlane.xlu1 %2857  ;;  %2872 = vadd.xlane.f32.xlu0 %v2871_v56 }
 0xe9a   : > { %v2862_v60 = vmul.f32 0.020833334, %v2858_v57  ;;  %v2868_v61 = vmul.f32 %v2864_v55, %v2864_v55  ;;  %v2869_v37 = vmul.f32 %v2865_v16, %v2865_v16 }
 0xe9c   : > { %v2866_v38 = vsub.f32 %v2844_v28, %v2862_v60  ;;  %v2874_v39 = vsel %vm938_vm1, %v2868_v61, 0.0  ;;  %v2877_v40 = vsel %vm938_vm1, %v2869_v37, 0.0 }
 0xe9d   : > { %2875 = vadd.xlane.f32.xlu1 %v2874_v39  ;;  %2878 = vadd.xlane.f32.xlu0 %v2877_v40 }
 0xe9e   : > { %v2870_v45 = vmul.f32 %v2866_v38, %v2866_v38 }
 0xea0   : > { %v2880_v5 = vsel %vm938_vm1, %v2870_v45, 0.0 }
 0xea1   : > { %2881 = vadd.xlane.f32.xlu1 %v2880_v5 }
 0xf22   : > { %v2873_v41 = vpop.xlane.xlu0 %2872 }
 0xf23   : > { %v2883_v42 = vmul.f32 0.020833334, %v2873_v41 }
 0xf25   : > { %v2887_v46 = vadd.f32 1e-05, %v2883_v42 }
 0xf26   : > { %v2876_v6 = vpop.xlane.xlu1 %2875  ;;  %v2879_v43 = vpop.xlane.xlu0 %2878 }
 0xf27   : > { %3872 = vrsqrt.f32 %v2887_v46  ;;  %v2884_v44 = vmul.f32 0.020833334, %v2876_v6  ;;  %v2885_v49 = vmul.f32 0.020833334, %v2879_v43 }
 0xf29   : > { %v2888_v50 = vadd.f32 1e-05, %v2884_v44  ;;  %v2889_v51 = vadd.f32 1e-05, %v2885_v49 }
 0xf2a   : > { %v2882_v52 = vpop.xlane.xlu1 %2881 }
 0xf2b   : > { %3874 = vrsqrt.f32 %v2888_v50  ;;  %v2886_v47 = vmul.f32 0.020833334, %v2882_v52 }
 0xf2c   : > { %3876 = vrsqrt.f32 %v2889_v51 }
 0xf2d   : > { %v2890_v7 = vadd.f32 1e-05, %v2886_v47 }
 0xf2f   : > { %3878 = vrsqrt.f32 %v2890_v7 }
 0xf34   : > { %v3873_v54 = vpop.eup %3872 }
 0xf35   : > { %v2895_v8 = vmul.f32 %v3873_v54, %v2863_v32 }
 0xf37   : > { %v2905_v59 = vmul.f32 %v3430_v48, %v2895_v8 }
 0xf38   : > { %v3875_v62 = vpop.eup %3874 }
 0xf39   : > { %v3877_v13 = vpop.eup %3876  ;;  %v2915_v63 = vadd.f32 %v3431_v58, %v2905_v59  ;;  %v2896_v0 = vmul.f32 %v3875_v62, %v2864_v55 }
 0xf3a   : > { %v2897_v1 = vmul.f32 %v3877_v13, %v2865_v16 }
 0xf3b   : > { %2919 = vst.msk [vmem:[#allocation2] sm:$0xff] %vm938_vm1, %v2915_v63  ;;  %v2906_v2 = vmul.f32 %v3430_v48, %v2896_v0 }
 0xf3c   : > { %v3879_v3 = vpop.eup %3878  ;;  %v2907_v4 = vmul.f32 %v3430_v48, %v2897_v1 }
 0xf3d   : > { %v2916_v9 = vadd.f32 %v3431_v58, %v2906_v2  ;;  %v2898_v15 = vmul.f32 %v3879_v3, %v2866_v38 }
 0xf3e   : > { %v2917_v10 = vadd.f32 %v3431_v58, %v2907_v4 }
 0xf3f   : > { %2920 = vst.msk [vmem:[#allocation2 + $0x8] sm:$0xff] %vm938_vm1, %v2916_v9  ;;  %v2908_v11 = vmul.f32 %v3430_v48, %v2898_v15  ;;  %2926 = sbr.rel (%p3432_p6) target bundleno = 4157 (0x103d), region = 104 }
 0xf40   : > { %2921 = vst.msk [vmem:[#allocation2 + $0x10] sm:$0xff] %vm938_vm1, %v2917_v10 }
 0xf41   : > { %v2918_v12 = vadd.f32 %v3431_v58, %v2908_v11 }
 0xf43   : > { %2922 = vst.msk [vmem:[#allocation2 + $0x18] sm:$0xff] %vm938_vm1, %v2918_v12 }
 0xf44   : > { %v3884_v14 = vld [vmem:[%s4513_s30 + $0x10] sm:$0xff]   ;;  %v2927_v17 = vpack.c.bf16 %v2916_v9, %v2915_v63  ;;  %v3885_v18 = vld [vmem:[%s4514_s21 + $0x8] sm:$0xff]   ;;  %v3886_v19 = vld [vmem:[%s4514_s21] sm:$0xff]   ;;  %v2928_v20 = vpack.c.bf16 %v2918_v12, %v2917_v10  ;;  %vm3039_vm5 = vcmask 15360  }
 0xf45   : > { %3740 = vmatprep.subr.bf16.mxu0 %v3884_v14  ;;  %v3433_v21 = vld [vmem:[%s4515_s3] ss:$0 sm:$0xff] }
 0xf46   : > { %3746 = vmatprep.mubr.msk.bf16.mxu0 %vm938_vm1, %v2927_v17  ;;  %3741 = vmatpush3.bf16.msra.mxu0 %v3884_v14 }
 0xf47   : > { %3742 = vmatprep.subr.bf16.mxu0 %v3885_v18 }
 0xf4a   : > { %3743 = vmatpush3.bf16.msra.mxu0 %v3885_v18 }
 0xf4b   : > { %3744 = vmatprep.subr.bf16.mxu0 %v3886_v19 }
 0xf4e   : > { %3745 = vmatpush3.bf16.msra.mxu0 %v3886_v19 }
 0xf51   : > { %3747 = vmatmul.mubr.msk.bf16.vlgmr.msra.gmra.mxu0 %vm938_vm1, %v2928_v20 }
0x1011   : > { %v3748_v22 = vpop.f32.mrf.mxu0 }
0x1012   : > { %v3009_v23 = vadd.f32 %v3748_v22, %v3433_v21 }
0x1013   : > { %v3000_v24 = vpop.f32.mrf.mxu0 }
0x1014   : > { %v3017_v25 = vsub.f32 0.0, %v3009_v23  ;;  %v3001_v26 = vadd.f32 %v3433_v21, %v3000_v24 }
0x1015   : > { %v3749_v27 = vpop.f32.mrf.mxu0 }
0x1016   : > { %v3023_v28 = vmul.f32 1.442695, %v3017_v25  ;;  %v3015_v29 = vsub.f32 0.0, %v3001_v26  ;;  %v3012_v30 = vadd.f32 %v3749_v27, %v3433_v21 }
0x1017   : > { %v3003_v31 = vpop.f32.mrf.mxu0 }
0x1018   : > { %3887 = vpow2.f32 %v3023_v28  ;;  %v3019_v32 = vmul.f32 1.442695, %v3015_v29  ;;  %v3018_v33 = vsub.f32 0.0, %v3012_v30  ;;  %v3004_v34 = vadd.f32 %v3433_v21, %v3003_v31 }
0x101a   : > { %3889 = vpow2.f32 %v3019_v32  ;;  %v3025_v35 = vmul.f32 1.442695, %v3018_v33  ;;  %v3016_v36 = vsub.f32 0.0, %v3004_v34 }
0x101c   : > { %3891 = vpow2.f32 %v3025_v35  ;;  %v3021_v53 = vmul.f32 1.442695, %v3016_v36 }
0x101e   : > { %3893 = vpow2.f32 %v3021_v53 }
0x1025   : > { %v3888_v55 = vpop.eup %3887 }
0x1026   : > { %v3029_v16 = vadd.f32 1.0, %v3888_v55 }
0x1027   : > { %v3890_v56 = vpop.eup %3889 }
0x1028   : > { %3895 = vrcp.f32 %v3029_v16  ;;  %v3027_v57 = vadd.f32 1.0, %v3890_v56 }
0x1029   : > { %v3892_v60 = vpop.eup %3891 }
0x102a   : > { %3897 = vrcp.f32 %v3027_v57  ;;  %v3030_v61 = vadd.f32 1.0, %v3892_v60 }
0x102b   : > { %v3894_v37 = vpop.eup %3893 }
0x102c   : > { %3899 = vrcp.f32 %v3030_v61  ;;  %v3028_v38 = vadd.f32 1.0, %v3894_v37 }
0x102e   : > { %3901 = vrcp.f32 %v3028_v38 }
0x1035   : > { %v3896_v39 = vpop.eup %3895 }
0x1036   : > { %3042 = vst.msk [vmem:[%s4516_s2 + $0x10] sm:$0xff] %vm3039_vm5, %v3896_v39 }
0x1037   : > { %v3898_v40 = vpop.eup %3897 }
0x1038   : > { %3040 = vst.msk [vmem:[%s4516_s2] sm:$0xff] %vm3039_vm5, %v3898_v40 }
0x1039   : > { %v3900_v45 = vpop.eup %3899 }
0x103a   : > { %3043 = vst.msk [vmem:[%s4516_s2 + $0x18] sm:$0xff] %vm3039_vm5, %v3900_v45 }
0x103b   : > { %v3902_v5 = vpop.eup %3901 }
0x103c   : > { %3041 = vst.msk [vmem:[%s4516_s2 + $0x8] sm:$0xff] %vm3039_vm5, %v3902_v5 }
0x103d PF: > { %s4517_s17 = sld [smem:[#allocation5_spill]] }
0x103e   : > { %s4518_s0 = sld [smem:[#allocation4_spill]] }
0x103f   : > { %s4519_s30 = sld [smem:[#allocation6_spill]] }
0x1043   : > { %s29_s20 = sadd.s32 1, %s4517_s17  }
0x1044   : > { %p26_p7 = scmp.ge.s32.totalorder %s29_s20, 4  }
0x1046   :  { %28 = sbr.rel (!%p26_p7) target bundleno = 13 (0xd), region = 196 }

</bundles_post_ra>
